<compile_context>
chip_gen: v7x
topology: tpu7x:2x2x1
jax: 0.10.0
libtpu: 0.0.40
codegen_flags: <defaults>
</compile_context>

<pallas_src>
import functools
import math

import jax
import jax.numpy as jnp
from jax import lax
from jax.experimental import pallas as pl
from jax.experimental.pallas import tpu as pltpu


def _decoder_layer_kernel(tgt_ref, pos_ref, mem_ref,
                          ln1w_ref, ln1b_ref, wqk1_ref, bqk1_ref,
                          wv1_ref, bv1_ref, wo1_ref, bo1_ref,
                          ln2w_ref, ln2b_ref, wq2_ref, bq2_ref,
                          wkv2_ref, bkv2_ref, wo2_ref, bo2_ref,
                          ln3w_ref, ln3b_ref, w1_ref, b1_ref, w2_ref, b2_ref,
                          out_ref, *, nhead, eps, mxu_dtype):
    bt, S, D = tgt_ref.shape
    Sm = mem_ref.shape[1]
    hd = D // nhead
    R = bt * S

    def mm(a, b):
        # MXU matmul; operands optionally cast to bf16, accumulation in f32.
        return jnp.dot(a.astype(mxu_dtype), b.astype(mxu_dtype),
                       preferred_element_type=jnp.float32)

    def layer_norm(x, w, b):
        mu = jnp.mean(x, axis=-1, keepdims=True)
        var = jnp.mean(jnp.square(x - mu), axis=-1, keepdims=True)
        return (x - mu) * lax.rsqrt(var + eps) * w + b

    def attention(q, k, v, sq, sk):
        # q: (bt*sq, D) with the 1/sqrt(hd) scale already folded into Wq/bq;
        # k, v: (bt*sk, D).  Per-(batch, head) matmuls contract the last dim,
        # so no activation transposes / relayouts are needed.
        # TODO(synk): attn_mask / key_padding_mask are not implemented
        #             (they are always None on the ACT forward path).
        # TODO(synk): for long sequences, tile the key axis with an online
        #             (flash-style) softmax instead of materializing (sq, sk).
        batches = []
        for bi in range(bt):
            qb = q[bi * sq:(bi + 1) * sq]
            kb = k[bi * sk:(bi + 1) * sk]
            vb = v[bi * sk:(bi + 1) * sk]
            heads = []
            for h in range(nhead):
                sl = slice(h * hd, (h + 1) * hd)
                s = lax.dot_general(qb[:, sl].astype(mxu_dtype),
                                    kb[:, sl].astype(mxu_dtype),
                                    (((1,), (1,)), ((), ())),
                                    preferred_element_type=jnp.float32)
                s = s - jnp.max(s, axis=-1, keepdims=True)
                p = jnp.exp(s)                               # f32 softmax
                l = jnp.sum(p, axis=-1, keepdims=True)
                heads.append(mm(p, vb[:, sl]) / l)           # (sq, hd)
            batches.append(jnp.concatenate(heads, axis=-1))  # (sq, D)
        return jnp.concatenate(batches, axis=0)              # (bt*sq, D)

    # Flatten (bt, S, D) -> (bt*S, D): fat M for every dense matmul.
    x = tgt_ref[...].reshape(R, D).astype(jnp.float32)
    pos = pos_ref[...].reshape(R, D).astype(jnp.float32)
    mem = mem_ref[...].reshape(bt * Sm, D).astype(jnp.float32)

    # ---- self-attention: Q/K from tgt + query_pos, V from norm1(tgt) ----
    qk_in = x + pos
    t2 = layer_norm(x, ln1w_ref[...], ln1b_ref[...])
    qk = mm(qk_in, wqk1_ref[...]) + bqk1_ref[...]            # (R, 2D) fused Q|K
    v1 = mm(t2, wv1_ref[...]) + bv1_ref[...]                 # (R, D)
    ctx1 = attention(qk[:, :D], qk[:, D:], v1, S, S)
    x = x + mm(ctx1, wo1_ref[...]) + bo1_ref[...]

    # ---- cross-attention: Q from norm2(tgt) + query_pos, K/V from memory ----
    t2 = layer_norm(x, ln2w_ref[...], ln2b_ref[...])
    q2 = mm(t2 + pos, wq2_ref[...]) + bq2_ref[...]           # (R, D)
    kv2 = mm(mem, wkv2_ref[...]) + bkv2_ref[...]             # (bt*Sm, 2D) K|V
    ctx2 = attention(q2, kv2[:, :D], kv2[:, D:], S, Sm)
    x = x + mm(ctx2, wo2_ref[...]) + bo2_ref[...]

    # ---- feed-forward ----
    t2 = layer_norm(x, ln3w_ref[...], ln3b_ref[...])
    hmid = jnp.maximum(mm(t2, w1_ref[...]) + b1_ref[...], 0.0)
    x = x + mm(hmid, w2_ref[...]) + b2_ref[...]

    out_ref[...] = x.reshape(bt, S, D).astype(out_ref.dtype)


def transformer_decoder_layer(tgt, memory, params, *, nhead, query_pos=None,
                              batch_block=1, mxu_dtype=jnp.float32, eps=1e-5):
    """tgt: (S, B, D), memory: (Sm, B, D), query_pos: (S, B, D) or None.

    Returns (S, B, D).  Dropout layers are identity (eval mode).
    """
    S, B, D = tgt.shape
    Sm = memory.shape[0]
    assert D % nhead == 0
    assert B % batch_block == 0
    bt = batch_block
    hd = D // nhead
    scale = 1.0 / math.sqrt(hd)
    dim_ff = params['lin1_w'].shape[0]

    # ---- wrapper-side weight prep: pre-transpose to (in, out), fuse Q|K and
    # K|V projections, fold the softmax scale into Wq/bq.  The kernel never
    # transposes or rescales a weight tile. ----
    saw, sab = params['sa_in_w'], params['sa_in_b']
    caw, cab = params['ca_in_w'], params['ca_in_b']
    wqk1 = jnp.concatenate([saw[:D].T * scale, saw[D:2 * D].T], axis=1)
    bqk1 = jnp.concatenate([sab[:D] * scale, sab[D:2 * D]])[None, :]
    wv1 = saw[2 * D:].T
    bv1 = sab[2 * D:][None, :]
    wo1 = params['sa_out_w'].T
    bo1 = params['sa_out_b'][None, :]
    wq2 = caw[:D].T * scale
    bq2 = (cab[:D] * scale)[None, :]
    wkv2 = jnp.concatenate([caw[D:2 * D].T, caw[2 * D:].T], axis=1)
    bkv2 = jnp.concatenate([cab[D:2 * D], cab[2 * D:]])[None, :]
    wo2 = params['ca_out_w'].T
    bo2 = params['ca_out_b'][None, :]
    w1t = params['lin1_w'].T
    b1 = params['lin1_b'][None, :]
    w2t = params['lin2_w'].T
    b2 = params['lin2_b'][None, :]
    ln1w, ln1b = params['norm1_w'][None, :], params['norm1_b'][None, :]
    ln2w, ln2b = params['norm2_w'][None, :], params['norm2_b'][None, :]
    ln3w, ln3b = params['norm3_w'][None, :], params['norm3_b'][None, :]

    pos = jnp.zeros_like(tgt) if query_pos is None else query_pos

    # Batch-major activations: the kernel then works on dense (bt*S, D) slabs
    # with lane-dense loads/stores and full-extent (S, D) blocks.
    tgt_b = jnp.transpose(tgt, (1, 0, 2))
    pos_b = jnp.transpose(pos, (1, 0, 2))
    mem_b = jnp.transpose(memory, (1, 0, 2))

    weights = [ln1w, ln1b, wqk1, bqk1, wv1, bv1, wo1, bo1,
               ln2w, ln2b, wq2, bq2, wkv2, bkv2, wo2, bo2,
               ln3w, ln3b, w1t, b1, w2t, b2]

    # NOTE: weights use constant index_maps (resident across the grid); they
    # are still pipeline double-buffered by Pallas -- for very large models on
    # v7x store them as bf16 and/or reduce buffering.
    def full(shape):
        n = len(shape)
        return pl.BlockSpec(shape, lambda b, _n=n: (0,) * _n)

    # Explicit VMEM budget: double-buffered activation blocks + weights + an
    # allowance for in-kernel intermediates (qkv, kv2, scores, FFN hidden).
    itemsize = 4
    w_bytes = sum(math.prod(w.shape) * itemsize for w in weights)
    act_bytes = itemsize * bt * (3 * S * D + Sm * D)
    inter_bytes = itemsize * (bt * S * (5 * D + dim_ff)
                              + bt * Sm * 2 * D
                              + nhead * S * max(S, Sm))
    vmem_limit = int(min(100 * 2**20,
                         max(32 * 2**20,
                             2 * w_bytes + 2 * act_bytes + 3 * inter_bytes
                             + (8 << 20))))

    kernel = functools.partial(_decoder_layer_kernel, nhead=nhead, eps=eps,
                               mxu_dtype=mxu_dtype)

    out = pl.pallas_call(
        kernel,
        out_shape=jax.ShapeDtypeStruct((B, S, D), tgt.dtype),
        grid_spec=pl.GridSpec(
            grid=(B // bt,),
            in_specs=[
                pl.BlockSpec((bt, S, D), lambda b: (b, 0, 0)),    # tgt
                pl.BlockSpec((bt, S, D), lambda b: (b, 0, 0)),    # query_pos
                pl.BlockSpec((bt, Sm, D), lambda b: (b, 0, 0)),   # memory
            ] + [full(w.shape) for w in weights],
            out_specs=pl.BlockSpec((bt, S, D), lambda b: (b, 0, 0)),
        ),
        compiler_params=pltpu.CompilerParams(
            dimension_semantics=("parallel",),
            vmem_limit_bytes=vmem_limit),
    )(tgt_b, pos_b, mem_b, *weights)

    return jnp.transpose(out, (1, 0, 2))


def reference(tgt, memory, params, query_pos, *, nhead, eps=1e-5):
    """Pure-JAX reference matching the PyTorch decoder layer (eval mode)."""
    S, B, D = tgt.shape
    hd = D // nhead
    scale = 1.0 / math.sqrt(hd)
    HI = lax.Precision.HIGHEST

    def ln(x, w, b):
        mu = x.mean(-1, keepdims=True)
        var = jnp.square(x - mu).mean(-1, keepdims=True)
        return (x - mu) * lax.rsqrt(var + eps) * w + b

    def mha(q_in, k_in, v_in, in_w, in_b, out_w, out_b):
        Sq, Sk = q_in.shape[0], k_in.shape[0]
        wq, wk, wv = in_w[:D], in_w[D:2 * D], in_w[2 * D:]
        bq, bk, bv = in_b[:D], in_b[D:2 * D], in_b[2 * D:]
        q = jnp.einsum('sbd,ed->sbe', q_in, wq, precision=HI) + bq
        k = jnp.einsum('sbd,ed->sbe', k_in, wk, precision=HI) + bk
        v = jnp.einsum('sbd,ed->sbe', v_in, wv, precision=HI) + bv
        qh = q.reshape(Sq, B, nhead, hd) * scale
        kh = k.reshape(Sk, B, nhead, hd)
        vh = v.reshape(Sk, B, nhead, hd)
        s = jnp.einsum('qbhd,kbhd->bhqk', qh, kh, precision=HI)
        p = jax.nn.softmax(s, axis=-1)
        ctx = jnp.einsum('bhqk,kbhd->qbhd', p, vh, precision=HI)
        ctx = ctx.reshape(Sq, B, D)
        return jnp.einsum('sbd,ed->sbe', ctx, out_w, precision=HI) + out_b

    pos = jnp.zeros_like(tgt) if query_pos is None else query_pos
    x = tgt
    qk = x + pos
    t2 = ln(x, params['norm1_w'], params['norm1_b'])
    x = x + mha(qk, qk, t2, params['sa_in_w'], params['sa_in_b'],
                params['sa_out_w'], params['sa_out_b'])
    t2 = ln(x, params['norm2_w'], params['norm2_b'])
    x = x + mha(t2 + pos, memory, memory, params['ca_in_w'], params['ca_in_b'],
                params['ca_out_w'], params['ca_out_b'])
    t2 = ln(x, params['norm3_w'], params['norm3_b'])
    h = jax.nn.relu(jnp.einsum('sbd,fd->sbf', t2, params['lin1_w'],
                               precision=HI) + params['lin1_b'])
    x = x + jnp.einsum('sbf,df->sbd', h, params['lin2_w'],
                       precision=HI) + params['lin2_b']
    return x


def make_params(key, d_model, dim_ff):
    D = d_model
    ks = jax.random.split(key, 18)
    n = lambda k, shape, sc=0.05: sc * jax.random.normal(k, shape, jnp.float32)
    return {
        'sa_in_w':  n(ks[0], (3 * D, D)),
        'sa_in_b':  n(ks[1], (3 * D,)),
        'sa_out_w': n(ks[2], (D, D)),
        'sa_out_b': n(ks[3], (D,)),
        'ca_in_w':  n(ks[4], (3 * D, D)),
        'ca_in_b':  n(ks[5], (3 * D,)),
        'ca_out_w': n(ks[6], (D, D)),
        'ca_out_b': n(ks[7], (D,)),
        'lin1_w':   n(ks[8], (dim_ff, D)),
        'lin1_b':   n(ks[9], (dim_ff,)),
        'lin2_w':   n(ks[10], (D, dim_ff)),
        'lin2_b':   n(ks[11], (D,)),
        'norm1_w':  1.0 + n(ks[12], (D,), 0.1),
        'norm1_b':  n(ks[13], (D,), 0.1),
        'norm2_w':  1.0 + n(ks[14], (D,), 0.1),
        'norm2_b':  n(ks[15], (D,), 0.1),
        'norm3_w':  1.0 + n(ks[16], (D,), 0.1),
        'norm3_b':  n(ks[17], (D,), 0.1),
    }


if __name__ == "__main__":
    S, SM, B, D, H, FF = 8, 16, 2, 128, 4, 256   # D multiple of 128: lane-dense
    key = jax.random.PRNGKey(0)
    k_tgt, k_mem, k_pos, k_par = jax.random.split(key, 4)
    tgt = jax.random.normal(k_tgt, (S, B, D), jnp.float32)
    memory = jax.random.normal(k_mem, (SM, B, D), jnp.float32)
    query_pos = 0.5 * jax.random.normal(k_pos, (S, B, D), jnp.float32)
    params = make_params(k_par, D, FF)

    # f32 path (exact)
    out = transformer_decoder_layer(tgt, memory, params, nhead=H,
                                    query_pos=query_pos)
    out = jax.block_until_ready(out)
    assert out.shape == (S, B, D)

    ref = reference(tgt, memory, params, query_pos, nhead=H)
    err = float(jnp.max(jnp.abs(out - ref)))
    assert jnp.allclose(out, ref, atol=5e-4, rtol=5e-4), err

    # bf16 MXU-operand path (v6e/v7x throughput; LN/softmax/accum stay f32).
    out_bf16 = transformer_decoder_layer(tgt, memory, params, nhead=H,
                                         query_pos=query_pos,
                                         mxu_dtype=jnp.bfloat16)
    out_bf16 = jax.block_until_ready(out_bf16)
    err_bf16 = float(jnp.max(jnp.abs(out_bf16 - ref)))
    assert err_bf16 < 0.15, err_bf16

    print("KERNEL_OK")
</pallas_src>

<mosaic_0001>
module attributes {stable_mosaic.version = 11 : i64} {
  func.func @_decoder_layer_kernel(%arg0: i32, %arg1: memref<1x8x128xf32, #tpu.memory_space<vmem>>, %arg2: memref<1x8x128xf32, #tpu.memory_space<vmem>>, %arg3: memref<1x16x128xf32, #tpu.memory_space<vmem>>, %arg4: memref<1x128xf32, #tpu.memory_space<vmem>>, %arg5: memref<1x128xf32, #tpu.memory_space<vmem>>, %arg6: memref<128x256xf32, #tpu.memory_space<vmem>>, %arg7: memref<1x256xf32, #tpu.memory_space<vmem>>, %arg8: memref<128x128xf32, #tpu.memory_space<vmem>>, %arg9: memref<1x128xf32, #tpu.memory_space<vmem>>, %arg10: memref<128x128xf32, #tpu.memory_space<vmem>>, %arg11: memref<1x128xf32, #tpu.memory_space<vmem>>, %arg12: memref<1x128xf32, #tpu.memory_space<vmem>>, %arg13: memref<1x128xf32, #tpu.memory_space<vmem>>, %arg14: memref<128x128xf32, #tpu.memory_space<vmem>>, %arg15: memref<1x128xf32, #tpu.memory_space<vmem>>, %arg16: memref<128x256xf32, #tpu.memory_space<vmem>>, %arg17: memref<1x256xf32, #tpu.memory_space<vmem>>, %arg18: memref<128x128xf32, #tpu.memory_space<vmem>>, %arg19: memref<1x128xf32, #tpu.memory_space<vmem>>, %arg20: memref<1x128xf32, #tpu.memory_space<vmem>>, %arg21: memref<1x128xf32, #tpu.memory_space<vmem>>, %arg22: memref<128x256xf32, #tpu.memory_space<vmem>>, %arg23: memref<1x256xf32, #tpu.memory_space<vmem>>, %arg24: memref<256x128xf32, #tpu.memory_space<vmem>>, %arg25: memref<1x128xf32, #tpu.memory_space<vmem>>, %arg26: memref<1x8x128xf32, #tpu.memory_space<vmem>>) attributes {dimension_semantics = [#tpu.dimension_semantics<parallel>], iteration_bounds = array<i64: 2>, scalar_prefetch = 0 : i64, scratch_operands = 0 : i64, tpu.core_type = #tpu.core_type<tc>, window_params = [{transform_indices = @transform_0, window_bounds = array<i64: 1, 8, 128>}, {transform_indices = @transform_1, window_bounds = array<i64: 1, 8, 128>}, {transform_indices = @transform_2, window_bounds = array<i64: 1, 16, 128>}, {pipeline_mode = #tpu.pipeline_mode<synchronous>, transform_indices = @transform_3, window_bounds = array<i64: 1, 128>}, {pipeline_mode = #tpu.pipeline_mode<synchronous>, transform_indices = @transform_4, window_bounds = array<i64: 1, 128>}, {pipeline_mode = #tpu.pipeline_mode<synchronous>, transform_indices = @transform_5, window_bounds = array<i64: 128, 256>}, {pipeline_mode = #tpu.pipeline_mode<synchronous>, transform_indices = @transform_6, window_bounds = array<i64: 1, 256>}, {pipeline_mode = #tpu.pipeline_mode<synchronous>, transform_indices = @transform_7, window_bounds = array<i64: 128, 128>}, {pipeline_mode = #tpu.pipeline_mode<synchronous>, transform_indices = @transform_8, window_bounds = array<i64: 1, 128>}, {pipeline_mode = #tpu.pipeline_mode<synchronous>, transform_indices = @transform_9, window_bounds = array<i64: 128, 128>}, {pipeline_mode = #tpu.pipeline_mode<synchronous>, transform_indices = @transform_10, window_bounds = array<i64: 1, 128>}, {pipeline_mode = #tpu.pipeline_mode<synchronous>, transform_indices = @transform_11, window_bounds = array<i64: 1, 128>}, {pipeline_mode = #tpu.pipeline_mode<synchronous>, transform_indices = @transform_12, window_bounds = array<i64: 1, 128>}, {pipeline_mode = #tpu.pipeline_mode<synchronous>, transform_indices = @transform_13, window_bounds = array<i64: 128, 128>}, {pipeline_mode = #tpu.pipeline_mode<synchronous>, transform_indices = @transform_14, window_bounds = array<i64: 1, 128>}, {pipeline_mode = #tpu.pipeline_mode<synchronous>, transform_indices = @transform_15, window_bounds = array<i64: 128, 256>}, {pipeline_mode = #tpu.pipeline_mode<synchronous>, transform_indices = @transform_16, window_bounds = array<i64: 1, 256>}, {pipeline_mode = #tpu.pipeline_mode<synchronous>, transform_indices = @transform_17, window_bounds = array<i64: 128, 128>}, {pipeline_mode = #tpu.pipeline_mode<synchronous>, transform_indices = @transform_18, window_bounds = array<i64: 1, 128>}, {pipeline_mode = #tpu.pipeline_mode<synchronous>, transform_indices = @transform_19, window_bounds = array<i64: 1, 128>}, {pipeline_mode = #tpu.pipeline_mode<synchronous>, transform_indices = @transform_20, window_bounds = array<i64: 1, 128>}, {pipeline_mode = #tpu.pipeline_mode<synchronous>, transform_indices = @transform_21, window_bounds = array<i64: 128, 256>}, {pipeline_mode = #tpu.pipeline_mode<synchronous>, transform_indices = @transform_22, window_bounds = array<i64: 1, 256>}, {pipeline_mode = #tpu.pipeline_mode<synchronous>, transform_indices = @transform_23, window_bounds = array<i64: 256, 128>}, {pipeline_mode = #tpu.pipeline_mode<synchronous>, transform_indices = @transform_24, window_bounds = array<i64: 1, 128>}, {transform_indices = @transform_25, window_bounds = array<i64: 1, 8, 128>}]} {
    %c0 = arith.constant 0 : index
    %c0_0 = arith.constant 0 : index
    %c0_1 = arith.constant 0 : index
    %0 = vector.load %arg1[%c0, %c0_0, %c0_1] : memref<1x8x128xf32, #tpu.memory_space<vmem>>, vector<1x8x128xf32>
    %1 = vector.shape_cast %0 : vector<1x8x128xf32> to vector<8x128xf32>
    %c0_2 = arith.constant 0 : index
    %c0_3 = arith.constant 0 : index
    %c0_4 = arith.constant 0 : index
    %2 = vector.load %arg2[%c0_2, %c0_3, %c0_4] : memref<1x8x128xf32, #tpu.memory_space<vmem>>, vector<1x8x128xf32>
    %3 = vector.shape_cast %2 : vector<1x8x128xf32> to vector<8x128xf32>
    %c0_5 = arith.constant 0 : index
    %c0_6 = arith.constant 0 : index
    %c0_7 = arith.constant 0 : index
    %4 = vector.load %arg3[%c0_5, %c0_6, %c0_7] : memref<1x16x128xf32, #tpu.memory_space<vmem>>, vector<1x16x128xf32>
    %5 = vector.shape_cast %4 : vector<1x16x128xf32> to vector<16x128xf32>
    %6 = arith.addf %1, %3 : vector<8x128xf32>
    %c0_8 = arith.constant 0 : index
    %c0_9 = arith.constant 0 : index
    %7 = vector.load %arg4[%c0_8, %c0_9] : memref<1x128xf32, #tpu.memory_space<vmem>>, vector<1x128xf32>
    %c0_10 = arith.constant 0 : index
    %c0_11 = arith.constant 0 : index
    %8 = vector.load %arg5[%c0_10, %c0_11] : memref<1x128xf32, #tpu.memory_space<vmem>>, vector<1x128xf32>
    %cst = arith.constant dense<0.000000e+00> : vector<8xf32>
    %9 = vector.multi_reduction <add>, %1, %cst [1] : vector<8x128xf32> to vector<8xf32>
    %10 = vector.shape_cast %9 : vector<8xf32> to vector<8x1xf32>
    %cst_12 = arith.constant 1.280000e+02 : f32
    %11 = vector.broadcast %cst_12 : f32 to vector<8x1xf32>
    %12 = arith.divf %10, %11 : vector<8x1xf32>
    %13 = vector.broadcast %12 : vector<8x1xf32> to vector<8x128xf32>
    %14 = arith.subf %1, %13 : vector<8x128xf32>
    %15 = arith.mulf %14, %14 : vector<8x128xf32>
    %cst_13 = arith.constant dense<0.000000e+00> : vector<8xf32>
    %16 = vector.multi_reduction <add>, %15, %cst_13 [1] : vector<8x128xf32> to vector<8xf32>
    %17 = vector.shape_cast %16 : vector<8xf32> to vector<8x1xf32>
    %cst_14 = arith.constant 1.280000e+02 : f32
    %18 = vector.broadcast %cst_14 : f32 to vector<8x1xf32>
    %19 = arith.divf %17, %18 : vector<8x1xf32>
    %20 = vector.broadcast %12 : vector<8x1xf32> to vector<8x128xf32>
    %21 = arith.subf %1, %20 : vector<8x128xf32>
    %cst_15 = arith.constant 9.99999974E-6 : f32
    %22 = vector.broadcast %cst_15 : f32 to vector<8x1xf32>
    %23 = arith.addf %19, %22 : vector<8x1xf32>
    %24 = math.rsqrt %23 : vector<8x1xf32>
    %25 = vector.broadcast %24 : vector<8x1xf32> to vector<8x128xf32>
    %26 = arith.mulf %21, %25 : vector<8x128xf32>
    %27 = vector.broadcast %7 : vector<1x128xf32> to vector<8x128xf32>
    %28 = arith.mulf %26, %27 : vector<8x128xf32>
    %29 = vector.broadcast %8 : vector<1x128xf32> to vector<8x128xf32>
    %30 = arith.addf %28, %29 : vector<8x128xf32>
    %c0_16 = arith.constant 0 : index
    %c0_17 = arith.constant 0 : index
    %31 = vector.load %arg6[%c0_16, %c0_17] : memref<128x256xf32, #tpu.memory_space<vmem>>, vector<128x256xf32>
    %cst_18 = arith.constant dense<0.000000e+00> : vector<8x256xf32>
    %32 = tpu.matmul %6, %31, %cst_18 {dimension_numbers = #tpu.dot_dimension_numbers<[1], [0], [0], [1], [0, 0, 1, 1], [], []>} : vector<8x128xf32>, vector<128x256xf32>, vector<8x256xf32> -> vector<8x256xf32>
    %c0_19 = arith.constant 0 : index
    %c0_20 = arith.constant 0 : index
    %33 = vector.load %arg7[%c0_19, %c0_20] : memref<1x256xf32, #tpu.memory_space<vmem>>, vector<1x256xf32>
    %34 = vector.broadcast %33 : vector<1x256xf32> to vector<8x256xf32>
    %35 = arith.addf %32, %34 : vector<8x256xf32>
    %c0_21 = arith.constant 0 : index
    %c0_22 = arith.constant 0 : index
    %36 = vector.load %arg8[%c0_21, %c0_22] : memref<128x128xf32, #tpu.memory_space<vmem>>, vector<128x128xf32>
    %cst_23 = arith.constant dense<0.000000e+00> : vector<8x128xf32>
    %37 = tpu.matmul %30, %36, %cst_23 {dimension_numbers = #tpu.dot_dimension_numbers<[1], [0], [0], [1], [0, 0, 1, 1], [], []>} : vector<8x128xf32>, vector<128x128xf32>, vector<8x128xf32> -> vector<8x128xf32>
    %c0_24 = arith.constant 0 : index
    %c0_25 = arith.constant 0 : index
    %38 = vector.load %arg9[%c0_24, %c0_25] : memref<1x128xf32, #tpu.memory_space<vmem>>, vector<1x128xf32>
    %39 = vector.broadcast %38 : vector<1x128xf32> to vector<8x128xf32>
    %40 = arith.addf %37, %39 : vector<8x128xf32>
    %41 = vector.extract_strided_slice %35 {offsets = [0, 0], sizes = [8, 128], strides = [1, 1]} : vector<8x256xf32> to vector<8x128xf32>
    %42 = vector.extract_strided_slice %35 {offsets = [0, 128], sizes = [8, 128], strides = [1, 1]} : vector<8x256xf32> to vector<8x128xf32>
    %43 = vector.extract_strided_slice %41 {offsets = [0, 0], sizes = [8, 32], strides = [1, 1]} : vector<8x128xf32> to vector<8x32xf32>
    %44 = vector.extract_strided_slice %42 {offsets = [0, 0], sizes = [8, 32], strides = [1, 1]} : vector<8x128xf32> to vector<8x32xf32>
    %cst_26 = arith.constant dense<0.000000e+00> : vector<8x8xf32>
    %45 = tpu.matmul %43, %44, %cst_26 {dimension_numbers = #tpu.dot_dimension_numbers<[1], [1], [0], [0], [0, 0, 1, 0], [], []>} : vector<8x32xf32>, vector<8x32xf32>, vector<8x8xf32> -> vector<8x8xf32>
    %cst_27 = arith.constant dense<0xFF800000> : vector<8xf32>
    %46 = vector.multi_reduction <maximumf>, %45, %cst_27 [1] : vector<8x8xf32> to vector<8xf32>
    %47 = vector.shape_cast %46 : vector<8xf32> to vector<8x1xf32>
    %48 = vector.broadcast %47 : vector<8x1xf32> to vector<8x8xf32>
    %49 = arith.subf %45, %48 : vector<8x8xf32>
    %50 = math.exp %49 : vector<8x8xf32>
    %cst_28 = arith.constant dense<0.000000e+00> : vector<8xf32>
    %51 = vector.multi_reduction <add>, %50, %cst_28 [1] : vector<8x8xf32> to vector<8xf32>
    %52 = vector.shape_cast %51 : vector<8xf32> to vector<8x1xf32>
    %53 = vector.extract_strided_slice %40 {offsets = [0, 0], sizes = [8, 32], strides = [1, 1]} : vector<8x128xf32> to vector<8x32xf32>
    %cst_29 = arith.constant dense<0.000000e+00> : vector<8x32xf32>
    %54 = tpu.matmul %50, %53, %cst_29 {dimension_numbers = #tpu.dot_dimension_numbers<[1], [0], [0], [1], [0, 0, 1, 1], [], []>} : vector<8x8xf32>, vector<8x32xf32>, vector<8x32xf32> -> vector<8x32xf32>
    %55 = vector.broadcast %52 : vector<8x1xf32> to vector<8x32xf32>
    %56 = arith.divf %54, %55 : vector<8x32xf32>
    %57 = vector.extract_strided_slice %41 {offsets = [0, 32], sizes = [8, 32], strides = [1, 1]} : vector<8x128xf32> to vector<8x32xf32>
    %58 = vector.extract_strided_slice %42 {offsets = [0, 32], sizes = [8, 32], strides = [1, 1]} : vector<8x128xf32> to vector<8x32xf32>
    %cst_30 = arith.constant dense<0.000000e+00> : vector<8x8xf32>
    %59 = tpu.matmul %57, %58, %cst_30 {dimension_numbers = #tpu.dot_dimension_numbers<[1], [1], [0], [0], [0, 0, 1, 0], [], []>} : vector<8x32xf32>, vector<8x32xf32>, vector<8x8xf32> -> vector<8x8xf32>
    %cst_31 = arith.constant dense<0xFF800000> : vector<8xf32>
    %60 = vector.multi_reduction <maximumf>, %59, %cst_31 [1] : vector<8x8xf32> to vector<8xf32>
    %61 = vector.shape_cast %60 : vector<8xf32> to vector<8x1xf32>
    %62 = vector.broadcast %61 : vector<8x1xf32> to vector<8x8xf32>
    %63 = arith.subf %59, %62 : vector<8x8xf32>
    %64 = math.exp %63 : vector<8x8xf32>
    %cst_32 = arith.constant dense<0.000000e+00> : vector<8xf32>
    %65 = vector.multi_reduction <add>, %64, %cst_32 [1] : vector<8x8xf32> to vector<8xf32>
    %66 = vector.shape_cast %65 : vector<8xf32> to vector<8x1xf32>
    %67 = vector.extract_strided_slice %40 {offsets = [0, 32], sizes = [8, 32], strides = [1, 1]} : vector<8x128xf32> to vector<8x32xf32>
    %cst_33 = arith.constant dense<0.000000e+00> : vector<8x32xf32>
    %68 = tpu.matmul %64, %67, %cst_33 {dimension_numbers = #tpu.dot_dimension_numbers<[1], [0], [0], [1], [0, 0, 1, 1], [], []>} : vector<8x8xf32>, vector<8x32xf32>, vector<8x32xf32> -> vector<8x32xf32>
    %69 = vector.broadcast %66 : vector<8x1xf32> to vector<8x32xf32>
    %70 = arith.divf %68, %69 : vector<8x32xf32>
    %71 = vector.extract_strided_slice %41 {offsets = [0, 64], sizes = [8, 32], strides = [1, 1]} : vector<8x128xf32> to vector<8x32xf32>
    %72 = vector.extract_strided_slice %42 {offsets = [0, 64], sizes = [8, 32], strides = [1, 1]} : vector<8x128xf32> to vector<8x32xf32>
    %cst_34 = arith.constant dense<0.000000e+00> : vector<8x8xf32>
    %73 = tpu.matmul %71, %72, %cst_34 {dimension_numbers = #tpu.dot_dimension_numbers<[1], [1], [0], [0], [0, 0, 1, 0], [], []>} : vector<8x32xf32>, vector<8x32xf32>, vector<8x8xf32> -> vector<8x8xf32>
    %cst_35 = arith.constant dense<0xFF800000> : vector<8xf32>
    %74 = vector.multi_reduction <maximumf>, %73, %cst_35 [1] : vector<8x8xf32> to vector<8xf32>
    %75 = vector.shape_cast %74 : vector<8xf32> to vector<8x1xf32>
    %76 = vector.broadcast %75 : vector<8x1xf32> to vector<8x8xf32>
    %77 = arith.subf %73, %76 : vector<8x8xf32>
    %78 = math.exp %77 : vector<8x8xf32>
    %cst_36 = arith.constant dense<0.000000e+00> : vector<8xf32>
    %79 = vector.multi_reduction <add>, %78, %cst_36 [1] : vector<8x8xf32> to vector<8xf32>
    %80 = vector.shape_cast %79 : vector<8xf32> to vector<8x1xf32>
    %81 = vector.extract_strided_slice %40 {offsets = [0, 64], sizes = [8, 32], strides = [1, 1]} : vector<8x128xf32> to vector<8x32xf32>
    %cst_37 = arith.constant dense<0.000000e+00> : vector<8x32xf32>
    %82 = tpu.matmul %78, %81, %cst_37 {dimension_numbers = #tpu.dot_dimension_numbers<[1], [0], [0], [1], [0, 0, 1, 1], [], []>} : vector<8x8xf32>, vector<8x32xf32>, vector<8x32xf32> -> vector<8x32xf32>
    %83 = vector.broadcast %80 : vector<8x1xf32> to vector<8x32xf32>
    %84 = arith.divf %82, %83 : vector<8x32xf32>
    %85 = vector.extract_strided_slice %41 {offsets = [0, 96], sizes = [8, 32], strides = [1, 1]} : vector<8x128xf32> to vector<8x32xf32>
    %86 = vector.extract_strided_slice %42 {offsets = [0, 96], sizes = [8, 32], strides = [1, 1]} : vector<8x128xf32> to vector<8x32xf32>
    %cst_38 = arith.constant dense<0.000000e+00> : vector<8x8xf32>
    %87 = tpu.matmul %85, %86, %cst_38 {dimension_numbers = #tpu.dot_dimension_numbers<[1], [1], [0], [0], [0, 0, 1, 0], [], []>} : vector<8x32xf32>, vector<8x32xf32>, vector<8x8xf32> -> vector<8x8xf32>
    %cst_39 = arith.constant dense<0xFF800000> : vector<8xf32>
    %88 = vector.multi_reduction <maximumf>, %87, %cst_39 [1] : vector<8x8xf32> to vector<8xf32>
    %89 = vector.shape_cast %88 : vector<8xf32> to vector<8x1xf32>
    %90 = vector.broadcast %89 : vector<8x1xf32> to vector<8x8xf32>
    %91 = arith.subf %87, %90 : vector<8x8xf32>
    %92 = math.exp %91 : vector<8x8xf32>
    %cst_40 = arith.constant dense<0.000000e+00> : vector<8xf32>
    %93 = vector.multi_reduction <add>, %92, %cst_40 [1] : vector<8x8xf32> to vector<8xf32>
    %94 = vector.shape_cast %93 : vector<8xf32> to vector<8x1xf32>
    %95 = vector.extract_strided_slice %40 {offsets = [0, 96], sizes = [8, 32], strides = [1, 1]} : vector<8x128xf32> to vector<8x32xf32>
    %cst_41 = arith.constant dense<0.000000e+00> : vector<8x32xf32>
    %96 = tpu.matmul %92, %95, %cst_41 {dimension_numbers = #tpu.dot_dimension_numbers<[1], [0], [0], [1], [0, 0, 1, 1], [], []>} : vector<8x8xf32>, vector<8x32xf32>, vector<8x32xf32> -> vector<8x32xf32>
    %97 = vector.broadcast %94 : vector<8x1xf32> to vector<8x32xf32>
    %98 = arith.divf %96, %97 : vector<8x32xf32>
    %99 = tpu.concatenate %56, %70, %84, %98 in 1 : vector<8x32xf32>, vector<8x32xf32>, vector<8x32xf32>, vector<8x32xf32> -> vector<8x128xf32>
    %c0_42 = arith.constant 0 : index
    %c0_43 = arith.constant 0 : index
    %100 = vector.load %arg10[%c0_42, %c0_43] : memref<128x128xf32, #tpu.memory_space<vmem>>, vector<128x128xf32>
    %cst_44 = arith.constant dense<0.000000e+00> : vector<8x128xf32>
    %101 = tpu.matmul %99, %100, %cst_44 {dimension_numbers = #tpu.dot_dimension_numbers<[1], [0], [0], [1], [0, 0, 1, 1], [], []>} : vector<8x128xf32>, vector<128x128xf32>, vector<8x128xf32> -> vector<8x128xf32>
    %102 = arith.addf %1, %101 : vector<8x128xf32>
    %c0_45 = arith.constant 0 : index
    %c0_46 = arith.constant 0 : index
    %103 = vector.load %arg11[%c0_45, %c0_46] : memref<1x128xf32, #tpu.memory_space<vmem>>, vector<1x128xf32>
    %104 = vector.broadcast %103 : vector<1x128xf32> to vector<8x128xf32>
    %105 = arith.addf %102, %104 : vector<8x128xf32>
    %c0_47 = arith.constant 0 : index
    %c0_48 = arith.constant 0 : index
    %106 = vector.load %arg12[%c0_47, %c0_48] : memref<1x128xf32, #tpu.memory_space<vmem>>, vector<1x128xf32>
    %c0_49 = arith.constant 0 : index
    %c0_50 = arith.constant 0 : index
    %107 = vector.load %arg13[%c0_49, %c0_50] : memref<1x128xf32, #tpu.memory_space<vmem>>, vector<1x128xf32>
    %cst_51 = arith.constant dense<0.000000e+00> : vector<8xf32>
    %108 = vector.multi_reduction <add>, %105, %cst_51 [1] : vector<8x128xf32> to vector<8xf32>
    %109 = vector.shape_cast %108 : vector<8xf32> to vector<8x1xf32>
    %cst_52 = arith.constant 1.280000e+02 : f32
    %110 = vector.broadcast %cst_52 : f32 to vector<8x1xf32>
    %111 = arith.divf %109, %110 : vector<8x1xf32>
    %112 = vector.broadcast %111 : vector<8x1xf32> to vector<8x128xf32>
    %113 = arith.subf %105, %112 : vector<8x128xf32>
    %114 = arith.mulf %113, %113 : vector<8x128xf32>
    %cst_53 = arith.constant dense<0.000000e+00> : vector<8xf32>
    %115 = vector.multi_reduction <add>, %114, %cst_53 [1] : vector<8x128xf32> to vector<8xf32>
    %116 = vector.shape_cast %115 : vector<8xf32> to vector<8x1xf32>
    %cst_54 = arith.constant 1.280000e+02 : f32
    %117 = vector.broadcast %cst_54 : f32 to vector<8x1xf32>
    %118 = arith.divf %116, %117 : vector<8x1xf32>
    %119 = vector.broadcast %111 : vector<8x1xf32> to vector<8x128xf32>
    %120 = arith.subf %105, %119 : vector<8x128xf32>
    %cst_55 = arith.constant 9.99999974E-6 : f32
    %121 = vector.broadcast %cst_55 : f32 to vector<8x1xf32>
    %122 = arith.addf %118, %121 : vector<8x1xf32>
    %123 = math.rsqrt %122 : vector<8x1xf32>
    %124 = vector.broadcast %123 : vector<8x1xf32> to vector<8x128xf32>
    %125 = arith.mulf %120, %124 : vector<8x128xf32>
    %126 = vector.broadcast %106 : vector<1x128xf32> to vector<8x128xf32>
    %127 = arith.mulf %125, %126 : vector<8x128xf32>
    %128 = vector.broadcast %107 : vector<1x128xf32> to vector<8x128xf32>
    %129 = arith.addf %127, %128 : vector<8x128xf32>
    %130 = arith.addf %129, %3 : vector<8x128xf32>
    %c0_56 = arith.constant 0 : index
    %c0_57 = arith.constant 0 : index
    %131 = vector.load %arg14[%c0_56, %c0_57] : memref<128x128xf32, #tpu.memory_space<vmem>>, vector<128x128xf32>
    %cst_58 = arith.constant dense<0.000000e+00> : vector<8x128xf32>
    %132 = tpu.matmul %130, %131, %cst_58 {dimension_numbers = #tpu.dot_dimension_numbers<[1], [0], [0], [1], [0, 0, 1, 1], [], []>} : vector<8x128xf32>, vector<128x128xf32>, vector<8x128xf32> -> vector<8x128xf32>
    %c0_59 = arith.constant 0 : index
    %c0_60 = arith.constant 0 : index
    %133 = vector.load %arg15[%c0_59, %c0_60] : memref<1x128xf32, #tpu.memory_space<vmem>>, vector<1x128xf32>
    %134 = vector.broadcast %133 : vector<1x128xf32> to vector<8x128xf32>
    %135 = arith.addf %132, %134 : vector<8x128xf32>
    %c0_61 = arith.constant 0 : index
    %c0_62 = arith.constant 0 : index
    %136 = vector.load %arg16[%c0_61, %c0_62] : memref<128x256xf32, #tpu.memory_space<vmem>>, vector<128x256xf32>
    %cst_63 = arith.constant dense<0.000000e+00> : vector<16x256xf32>
    %137 = tpu.matmul %5, %136, %cst_63 {dimension_numbers = #tpu.dot_dimension_numbers<[1], [0], [0], [1], [0, 0, 1, 1], [], []>} : vector<16x128xf32>, vector<128x256xf32>, vector<16x256xf32> -> vector<16x256xf32>
    %c0_64 = arith.constant 0 : index
    %c0_65 = arith.constant 0 : index
    %138 = vector.load %arg17[%c0_64, %c0_65] : memref<1x256xf32, #tpu.memory_space<vmem>>, vector<1x256xf32>
    %139 = vector.broadcast %138 : vector<1x256xf32> to vector<16x256xf32>
    %140 = arith.addf %137, %139 : vector<16x256xf32>
    %141 = vector.extract_strided_slice %140 {offsets = [0, 0], sizes = [16, 128], strides = [1, 1]} : vector<16x256xf32> to vector<16x128xf32>
    %142 = vector.extract_strided_slice %140 {offsets = [0, 128], sizes = [16, 128], strides = [1, 1]} : vector<16x256xf32> to vector<16x128xf32>
    %143 = vector.extract_strided_slice %135 {offsets = [0, 0], sizes = [8, 32], strides = [1, 1]} : vector<8x128xf32> to vector<8x32xf32>
    %144 = vector.extract_strided_slice %141 {offsets = [0, 0], sizes = [16, 32], strides = [1, 1]} : vector<16x128xf32> to vector<16x32xf32>
    %cst_66 = arith.constant dense<0.000000e+00> : vector<8x16xf32>
    %145 = tpu.matmul %143, %144, %cst_66 {dimension_numbers = #tpu.dot_dimension_numbers<[1], [1], [0], [0], [0, 0, 1, 0], [], []>} : vector<8x32xf32>, vector<16x32xf32>, vector<8x16xf32> -> vector<8x16xf32>
    %cst_67 = arith.constant dense<0xFF800000> : vector<8xf32>
    %146 = vector.multi_reduction <maximumf>, %145, %cst_67 [1] : vector<8x16xf32> to vector<8xf32>
    %147 = vector.shape_cast %146 : vector<8xf32> to vector<8x1xf32>
    %148 = vector.broadcast %147 : vector<8x1xf32> to vector<8x16xf32>
    %149 = arith.subf %145, %148 : vector<8x16xf32>
    %150 = math.exp %149 : vector<8x16xf32>
    %cst_68 = arith.constant dense<0.000000e+00> : vector<8xf32>
    %151 = vector.multi_reduction <add>, %150, %cst_68 [1] : vector<8x16xf32> to vector<8xf32>
    %152 = vector.shape_cast %151 : vector<8xf32> to vector<8x1xf32>
    %153 = vector.extract_strided_slice %142 {offsets = [0, 0], sizes = [16, 32], strides = [1, 1]} : vector<16x128xf32> to vector<16x32xf32>
    %cst_69 = arith.constant dense<0.000000e+00> : vector<8x32xf32>
    %154 = tpu.matmul %150, %153, %cst_69 {dimension_numbers = #tpu.dot_dimension_numbers<[1], [0], [0], [1], [0, 0, 1, 1], [], []>} : vector<8x16xf32>, vector<16x32xf32>, vector<8x32xf32> -> vector<8x32xf32>
    %155 = vector.broadcast %152 : vector<8x1xf32> to vector<8x32xf32>
    %156 = arith.divf %154, %155 : vector<8x32xf32>
    %157 = vector.extract_strided_slice %135 {offsets = [0, 32], sizes = [8, 32], strides = [1, 1]} : vector<8x128xf32> to vector<8x32xf32>
    %158 = vector.extract_strided_slice %141 {offsets = [0, 32], sizes = [16, 32], strides = [1, 1]} : vector<16x128xf32> to vector<16x32xf32>
    %cst_70 = arith.constant dense<0.000000e+00> : vector<8x16xf32>
    %159 = tpu.matmul %157, %158, %cst_70 {dimension_numbers = #tpu.dot_dimension_numbers<[1], [1], [0], [0], [0, 0, 1, 0], [], []>} : vector<8x32xf32>, vector<16x32xf32>, vector<8x16xf32> -> vector<8x16xf32>
    %cst_71 = arith.constant dense<0xFF800000> : vector<8xf32>
    %160 = vector.multi_reduction <maximumf>, %159, %cst_71 [1] : vector<8x16xf32> to vector<8xf32>
    %161 = vector.shape_cast %160 : vector<8xf32> to vector<8x1xf32>
    %162 = vector.broadcast %161 : vector<8x1xf32> to vector<8x16xf32>
    %163 = arith.subf %159, %162 : vector<8x16xf32>
    %164 = math.exp %163 : vector<8x16xf32>
    %cst_72 = arith.constant dense<0.000000e+00> : vector<8xf32>
    %165 = vector.multi_reduction <add>, %164, %cst_72 [1] : vector<8x16xf32> to vector<8xf32>
    %166 = vector.shape_cast %165 : vector<8xf32> to vector<8x1xf32>
    %167 = vector.extract_strided_slice %142 {offsets = [0, 32], sizes = [16, 32], strides = [1, 1]} : vector<16x128xf32> to vector<16x32xf32>
    %cst_73 = arith.constant dense<0.000000e+00> : vector<8x32xf32>
    %168 = tpu.matmul %164, %167, %cst_73 {dimension_numbers = #tpu.dot_dimension_numbers<[1], [0], [0], [1], [0, 0, 1, 1], [], []>} : vector<8x16xf32>, vector<16x32xf32>, vector<8x32xf32> -> vector<8x32xf32>
    %169 = vector.broadcast %166 : vector<8x1xf32> to vector<8x32xf32>
    %170 = arith.divf %168, %169 : vector<8x32xf32>
    %171 = vector.extract_strided_slice %135 {offsets = [0, 64], sizes = [8, 32], strides = [1, 1]} : vector<8x128xf32> to vector<8x32xf32>
    %172 = vector.extract_strided_slice %141 {offsets = [0, 64], sizes = [16, 32], strides = [1, 1]} : vector<16x128xf32> to vector<16x32xf32>
    %cst_74 = arith.constant dense<0.000000e+00> : vector<8x16xf32>
    %173 = tpu.matmul %171, %172, %cst_74 {dimension_numbers = #tpu.dot_dimension_numbers<[1], [1], [0], [0], [0, 0, 1, 0], [], []>} : vector<8x32xf32>, vector<16x32xf32>, vector<8x16xf32> -> vector<8x16xf32>
    %cst_75 = arith.constant dense<0xFF800000> : vector<8xf32>
    %174 = vector.multi_reduction <maximumf>, %173, %cst_75 [1] : vector<8x16xf32> to vector<8xf32>
    %175 = vector.shape_cast %174 : vector<8xf32> to vector<8x1xf32>
    %176 = vector.broadcast %175 : vector<8x1xf32> to vector<8x16xf32>
    %177 = arith.subf %173, %176 : vector<8x16xf32>
    %178 = math.exp %177 : vector<8x16xf32>
    %cst_76 = arith.constant dense<0.000000e+00> : vector<8xf32>
    %179 = vector.multi_reduction <add>, %178, %cst_76 [1] : vector<8x16xf32> to vector<8xf32>
    %180 = vector.shape_cast %179 : vector<8xf32> to vector<8x1xf32>
    %181 = vector.extract_strided_slice %142 {offsets = [0, 64], sizes = [16, 32], strides = [1, 1]} : vector<16x128xf32> to vector<16x32xf32>
    %cst_77 = arith.constant dense<0.000000e+00> : vector<8x32xf32>
    %182 = tpu.matmul %178, %181, %cst_77 {dimension_numbers = #tpu.dot_dimension_numbers<[1], [0], [0], [1], [0, 0, 1, 1], [], []>} : vector<8x16xf32>, vector<16x32xf32>, vector<8x32xf32> -> vector<8x32xf32>
    %183 = vector.broadcast %180 : vector<8x1xf32> to vector<8x32xf32>
    %184 = arith.divf %182, %183 : vector<8x32xf32>
    %185 = vector.extract_strided_slice %135 {offsets = [0, 96], sizes = [8, 32], strides = [1, 1]} : vector<8x128xf32> to vector<8x32xf32>
    %186 = vector.extract_strided_slice %141 {offsets = [0, 96], sizes = [16, 32], strides = [1, 1]} : vector<16x128xf32> to vector<16x32xf32>
    %cst_78 = arith.constant dense<0.000000e+00> : vector<8x16xf32>
    %187 = tpu.matmul %185, %186, %cst_78 {dimension_numbers = #tpu.dot_dimension_numbers<[1], [1], [0], [0], [0, 0, 1, 0], [], []>} : vector<8x32xf32>, vector<16x32xf32>, vector<8x16xf32> -> vector<8x16xf32>
    %cst_79 = arith.constant dense<0xFF800000> : vector<8xf32>
    %188 = vector.multi_reduction <maximumf>, %187, %cst_79 [1] : vector<8x16xf32> to vector<8xf32>
    %189 = vector.shape_cast %188 : vector<8xf32> to vector<8x1xf32>
    %190 = vector.broadcast %189 : vector<8x1xf32> to vector<8x16xf32>
    %191 = arith.subf %187, %190 : vector<8x16xf32>
    %192 = math.exp %191 : vector<8x16xf32>
    %cst_80 = arith.constant dense<0.000000e+00> : vector<8xf32>
    %193 = vector.multi_reduction <add>, %192, %cst_80 [1] : vector<8x16xf32> to vector<8xf32>
    %194 = vector.shape_cast %193 : vector<8xf32> to vector<8x1xf32>
    %195 = vector.extract_strided_slice %142 {offsets = [0, 96], sizes = [16, 32], strides = [1, 1]} : vector<16x128xf32> to vector<16x32xf32>
    %cst_81 = arith.constant dense<0.000000e+00> : vector<8x32xf32>
    %196 = tpu.matmul %192, %195, %cst_81 {dimension_numbers = #tpu.dot_dimension_numbers<[1], [0], [0], [1], [0, 0, 1, 1], [], []>} : vector<8x16xf32>, vector<16x32xf32>, vector<8x32xf32> -> vector<8x32xf32>
    %197 = vector.broadcast %194 : vector<8x1xf32> to vector<8x32xf32>
    %198 = arith.divf %196, %197 : vector<8x32xf32>
    %199 = tpu.concatenate %156, %170, %184, %198 in 1 : vector<8x32xf32>, vector<8x32xf32>, vector<8x32xf32>, vector<8x32xf32> -> vector<8x128xf32>
    %c0_82 = arith.constant 0 : index
    %c0_83 = arith.constant 0 : index
    %200 = vector.load %arg18[%c0_82, %c0_83] : memref<128x128xf32, #tpu.memory_space<vmem>>, vector<128x128xf32>
    %cst_84 = arith.constant dense<0.000000e+00> : vector<8x128xf32>
    %201 = tpu.matmul %199, %200, %cst_84 {dimension_numbers = #tpu.dot_dimension_numbers<[1], [0], [0], [1], [0, 0, 1, 1], [], []>} : vector<8x128xf32>, vector<128x128xf32>, vector<8x128xf32> -> vector<8x128xf32>
    %202 = arith.addf %105, %201 : vector<8x128xf32>
    %c0_85 = arith.constant 0 : index
    %c0_86 = arith.constant 0 : index
    %203 = vector.load %arg19[%c0_85, %c0_86] : memref<1x128xf32, #tpu.memory_space<vmem>>, vector<1x128xf32>
    %204 = vector.broadcast %203 : vector<1x128xf32> to vector<8x128xf32>
    %205 = arith.addf %202, %204 : vector<8x128xf32>
    %c0_87 = arith.constant 0 : index
    %c0_88 = arith.constant 0 : index
    %206 = vector.load %arg20[%c0_87, %c0_88] : memref<1x128xf32, #tpu.memory_space<vmem>>, vector<1x128xf32>
    %c0_89 = arith.constant 0 : index
    %c0_90 = arith.constant 0 : index
    %207 = vector.load %arg21[%c0_89, %c0_90] : memref<1x128xf32, #tpu.memory_space<vmem>>, vector<1x128xf32>
    %cst_91 = arith.constant dense<0.000000e+00> : vector<8xf32>
    %208 = vector.multi_reduction <add>, %205, %cst_91 [1] : vector<8x128xf32> to vector<8xf32>
    %209 = vector.shape_cast %208 : vector<8xf32> to vector<8x1xf32>
    %cst_92 = arith.constant 1.280000e+02 : f32
    %210 = vector.broadcast %cst_92 : f32 to vector<8x1xf32>
    %211 = arith.divf %209, %210 : vector<8x1xf32>
    %212 = vector.broadcast %211 : vector<8x1xf32> to vector<8x128xf32>
    %213 = arith.subf %205, %212 : vector<8x128xf32>
    %214 = arith.mulf %213, %213 : vector<8x128xf32>
    %cst_93 = arith.constant dense<0.000000e+00> : vector<8xf32>
    %215 = vector.multi_reduction <add>, %214, %cst_93 [1] : vector<8x128xf32> to vector<8xf32>
    %216 = vector.shape_cast %215 : vector<8xf32> to vector<8x1xf32>
    %cst_94 = arith.constant 1.280000e+02 : f32
    %217 = vector.broadcast %cst_94 : f32 to vector<8x1xf32>
    %218 = arith.divf %216, %217 : vector<8x1xf32>
    %219 = vector.broadcast %211 : vector<8x1xf32> to vector<8x128xf32>
    %220 = arith.subf %205, %219 : vector<8x128xf32>
    %cst_95 = arith.constant 9.99999974E-6 : f32
    %221 = vector.broadcast %cst_95 : f32 to vector<8x1xf32>
    %222 = arith.addf %218, %221 : vector<8x1xf32>
    %223 = math.rsqrt %222 : vector<8x1xf32>
    %224 = vector.broadcast %223 : vector<8x1xf32> to vector<8x128xf32>
    %225 = arith.mulf %220, %224 : vector<8x128xf32>
    %226 = vector.broadcast %206 : vector<1x128xf32> to vector<8x128xf32>
    %227 = arith.mulf %225, %226 : vector<8x128xf32>
    %228 = vector.broadcast %207 : vector<1x128xf32> to vector<8x128xf32>
    %229 = arith.addf %227, %228 : vector<8x128xf32>
    %c0_96 = arith.constant 0 : index
    %c0_97 = arith.constant 0 : index
    %230 = vector.load %arg22[%c0_96, %c0_97] : memref<128x256xf32, #tpu.memory_space<vmem>>, vector<128x256xf32>
    %cst_98 = arith.constant dense<0.000000e+00> : vector<8x256xf32>
    %231 = tpu.matmul %229, %230, %cst_98 {dimension_numbers = #tpu.dot_dimension_numbers<[1], [0], [0], [1], [0, 0, 1, 1], [], []>} : vector<8x128xf32>, vector<128x256xf32>, vector<8x256xf32> -> vector<8x256xf32>
    %c0_99 = arith.constant 0 : index
    %c0_100 = arith.constant 0 : index
    %232 = vector.load %arg23[%c0_99, %c0_100] : memref<1x256xf32, #tpu.memory_space<vmem>>, vector<1x256xf32>
    %233 = vector.broadcast %232 : vector<1x256xf32> to vector<8x256xf32>
    %234 = arith.addf %231, %233 : vector<8x256xf32>
    %cst_101 = arith.constant 0.000000e+00 : f32
    %235 = vector.broadcast %cst_101 : f32 to vector<8x256xf32>
    %236 = arith.maximumf %234, %235 : vector<8x256xf32>
    %c0_102 = arith.constant 0 : index
    %c0_103 = arith.constant 0 : index
    %237 = vector.load %arg24[%c0_102, %c0_103] : memref<256x128xf32, #tpu.memory_space<vmem>>, vector<256x128xf32>
    %cst_104 = arith.constant dense<0.000000e+00> : vector<8x128xf32>
    %238 = tpu.matmul %236, %237, %cst_104 {dimension_numbers = #tpu.dot_dimension_numbers<[1], [0], [0], [1], [0, 0, 1, 1], [], []>} : vector<8x256xf32>, vector<256x128xf32>, vector<8x128xf32> -> vector<8x128xf32>
    %239 = arith.addf %205, %238 : vector<8x128xf32>
    %c0_105 = arith.constant 0 : index
    %c0_106 = arith.constant 0 : index
    %240 = vector.load %arg25[%c0_105, %c0_106] : memref<1x128xf32, #tpu.memory_space<vmem>>, vector<1x128xf32>
    %241 = vector.broadcast %240 : vector<1x128xf32> to vector<8x128xf32>
    %242 = arith.addf %239, %241 : vector<8x128xf32>
    %243 = vector.shape_cast %242 : vector<8x128xf32> to vector<1x8x128xf32>
    %c0_107 = arith.constant 0 : index
    %c0_108 = arith.constant 0 : index
    %c0_109 = arith.constant 0 : index
    %244 = vector.load %arg26[%c0_107, %c0_108, %c0_109] : memref<1x8x128xf32, #tpu.memory_space<vmem>>, vector<1x8x128xf32>
    tpu.vector_store %arg26[%c0_107, %c0_108, %c0_109], %243 {strides = array<i32>} : memref<1x8x128xf32, #tpu.memory_space<vmem>>, vector<1x8x128xf32>,
    return
  }
  func.func @transform_0(%arg0: i32) -> (i32, i32, i32) {
    %c0_i32 = arith.constant 0 : i32
    %c0_i32_0 = arith.constant 0 : i32
    %c0_i32_1 = arith.constant 0 : i32
    return %arg0, %c0_i32, %c0_i32_0 : i32, i32, i32
  }
  func.func @transform_1(%arg0: i32) -> (i32, i32, i32) {
    %c0_i32 = arith.constant 0 : i32
    %c0_i32_0 = arith.constant 0 : i32
    %c0_i32_1 = arith.constant 0 : i32
    return %arg0, %c0_i32, %c0_i32_0 : i32, i32, i32
  }
  func.func @transform_2(%arg0: i32) -> (i32, i32, i32) {
    %c0_i32 = arith.constant 0 : i32
    %c0_i32_0 = arith.constant 0 : i32
    %c0_i32_1 = arith.constant 0 : i32
    return %arg0, %c0_i32, %c0_i32_0 : i32, i32, i32
  }
  func.func @transform_3(%arg0: i32) -> (i32, i32) {
    %c0_i32 = arith.constant 0 : i32
    %c0_i32_0 = arith.constant 0 : i32
    %c0_i32_1 = arith.constant 0 : i32
    return %c0_i32, %c0_i32_0 : i32, i32
  }
  func.func @transform_4(%arg0: i32) -> (i32, i32) {
    %c0_i32 = arith.constant 0 : i32
    %c0_i32_0 = arith.constant 0 : i32
    %c0_i32_1 = arith.constant 0 : i32
    return %c0_i32, %c0_i32_0 : i32, i32
  }
  func.func @transform_5(%arg0: i32) -> (i32, i32) {
    %c0_i32 = arith.constant 0 : i32
    %c0_i32_0 = arith.constant 0 : i32
    %c0_i32_1 = arith.constant 0 : i32
    return %c0_i32, %c0_i32_0 : i32, i32
  }
  func.func @transform_6(%arg0: i32) -> (i32, i32) {
    %c0_i32 = arith.constant 0 : i32
    %c0_i32_0 = arith.constant 0 : i32
    %c0_i32_1 = arith.constant 0 : i32
    return %c0_i32, %c0_i32_0 : i32, i32
  }
  func.func @transform_7(%arg0: i32) -> (i32, i32) {
    %c0_i32 = arith.constant 0 : i32
    %c0_i32_0 = arith.constant 0 : i32
    %c0_i32_1 = arith.constant 0 : i32
    return %c0_i32, %c0_i32_0 : i32, i32
  }
  func.func @transform_8(%arg0: i32) -> (i32, i32) {
    %c0_i32 = arith.constant 0 : i32
    %c0_i32_0 = arith.constant 0 : i32
    %c0_i32_1 = arith.constant 0 : i32
    return %c0_i32, %c0_i32_0 : i32, i32
  }
  func.func @transform_9(%arg0: i32) -> (i32, i32) {
    %c0_i32 = arith.constant 0 : i32
    %c0_i32_0 = arith.constant 0 : i32
    %c0_i32_1 = arith.constant 0 : i32
    return %c0_i32, %c0_i32_0 : i32, i32
  }
  func.func @transform_10(%arg0: i32) -> (i32, i32) {
    %c0_i32 = arith.constant 0 : i32
    %c0_i32_0 = arith.constant 0 : i32
    %c0_i32_1 = arith.constant 0 : i32
    return %c0_i32, %c0_i32_0 : i32, i32
  }
  func.func @transform_11(%arg0: i32) -> (i32, i32) {
    %c0_i32 = arith.constant 0 : i32
    %c0_i32_0 = arith.constant 0 : i32
    %c0_i32_1 = arith.constant 0 : i32
    return %c0_i32, %c0_i32_0 : i32, i32
  }
  func.func @transform_12(%arg0: i32) -> (i32, i32) {
    %c0_i32 = arith.constant 0 : i32
    %c0_i32_0 = arith.constant 0 : i32
    %c0_i32_1 = arith.constant 0 : i32
    return %c0_i32, %c0_i32_0 : i32, i32
  }
  func.func @transform_13(%arg0: i32) -> (i32, i32) {
    %c0_i32 = arith.constant 0 : i32
    %c0_i32_0 = arith.constant 0 : i32
    %c0_i32_1 = arith.constant 0 : i32
    return %c0_i32, %c0_i32_0 : i32, i32
  }
  func.func @transform_14(%arg0: i32) -> (i32, i32) {
    %c0_i32 = arith.constant 0 : i32
    %c0_i32_0 = arith.constant 0 : i32
    %c0_i32_1 = arith.constant 0 : i32
    return %c0_i32, %c0_i32_0 : i32, i32
  }
  func.func @transform_15(%arg0: i32) -> (i32, i32) {
    %c0_i32 = arith.constant 0 : i32
    %c0_i32_0 = arith.constant 0 : i32
    %c0_i32_1 = arith.constant 0 : i32
    return %c0_i32, %c0_i32_0 : i32, i32
  }
  func.func @transform_16(%arg0: i32) -> (i32, i32) {
    %c0_i32 = arith.constant 0 : i32
    %c0_i32_0 = arith.constant 0 : i32
    %c0_i32_1 = arith.constant 0 : i32
    return %c0_i32, %c0_i32_0 : i32, i32
  }
  func.func @transform_17(%arg0: i32) -> (i32, i32) {
    %c0_i32 = arith.constant 0 : i32
    %c0_i32_0 = arith.constant 0 : i32
    %c0_i32_1 = arith.constant 0 : i32
    return %c0_i32, %c0_i32_0 : i32, i32
  }
  func.func @transform_18(%arg0: i32) -> (i32, i32) {
    %c0_i32 = arith.constant 0 : i32
    %c0_i32_0 = arith.constant 0 : i32
    %c0_i32_1 = arith.constant 0 : i32
    return %c0_i32, %c0_i32_0 : i32, i32
  }
  func.func @transform_19(%arg0: i32) -> (i32, i32) {
    %c0_i32 = arith.constant 0 : i32
    %c0_i32_0 = arith.constant 0 : i32
    %c0_i32_1 = arith.constant 0 : i32
    return %c0_i32, %c0_i32_0 : i32, i32
  }
  func.func @transform_20(%arg0: i32) -> (i32, i32) {
    %c0_i32 = arith.constant 0 : i32
    %c0_i32_0 = arith.constant 0 : i32
    %c0_i32_1 = arith.constant 0 : i32
    return %c0_i32, %c0_i32_0 : i32, i32
  }
  func.func @transform_21(%arg0: i32) -> (i32, i32) {
    %c0_i32 = arith.constant 0 : i32
    %c0_i32_0 = arith.constant 0 : i32
    %c0_i32_1 = arith.constant 0 : i32
    return %c0_i32, %c0_i32_0 : i32, i32
  }
  func.func @transform_22(%arg0: i32) -> (i32, i32) {
    %c0_i32 = arith.constant 0 : i32
    %c0_i32_0 = arith.constant 0 : i32
    %c0_i32_1 = arith.constant 0 : i32
    return %c0_i32, %c0_i32_0 : i32, i32
  }
  func.func @transform_23(%arg0: i32) -> (i32, i32) {
    %c0_i32 = arith.constant 0 : i32
    %c0_i32_0 = arith.constant 0 : i32
    %c0_i32_1 = arith.constant 0 : i32
    return %c0_i32, %c0_i32_0 : i32, i32
  }
  func.func @transform_24(%arg0: i32) -> (i32, i32) {
    %c0_i32 = arith.constant 0 : i32
    %c0_i32_0 = arith.constant 0 : i32
    %c0_i32_1 = arith.constant 0 : i32
    return %c0_i32, %c0_i32_0 : i32, i32
  }
  func.func @transform_25(%arg0: i32) -> (i32, i32, i32) {
    %c0_i32 = arith.constant 0 : i32
    %c0_i32_0 = arith.constant 0 : i32
    %c0_i32_1 = arith.constant 0 : i32
    return %arg0, %c0_i32, %c0_i32_0 : i32, i32, i32
  }
}

</mosaic_0001>

<bundles_post_ra>
// kernel: tpu_custom_call.1
= control target key start
LH: loop header
LB: loop body
LE: loop exit
PB: predicated region body
PF: predicated region fallthrough
CT: control target
= control target key end

     0   :  { %s5693_s0 = inlined_call_operand.hbm [shape: f32[2,8,128], index: 0, kind: input, shape index: {}]   ;;  %s5694_s1 = inlined_call_operand.hbm [shape: f32[2,8,128], index: 1, kind: input, shape index: {}]   ;;  %s5695_s2 = inlined_call_operand.hbm [shape: f32[2,16,128], index: 2, kind: input, shape index: {}]   ;;  %s5696_s3 = inlined_call_operand.vmem [shape: f32[1,128], index: 3, kind: input, shape index: {}]   ;;  %s5697_s4 = inlined_call_operand.vmem [shape: f32[1,128], index: 4, kind: input, shape index: {}]   ;;  %s5698_s5 = inlined_call_operand.hbm [shape: f32[128,256], index: 5, kind: input, shape index: {}]   ;;  %s5699_s6 = inlined_call_operand.vmem [shape: f32[1,256], index: 6, kind: input, shape index: {}]   ;;  %s5700_s7 = inlined_call_operand.hbm [shape: f32[128,128], index: 7, kind: input, shape index: {}]   ;;  %s5701_s8 = inlined_call_operand.vmem [shape: f32[1,128], index: 8, kind: input, shape index: {}]   ;;  %s5702_s9 = inlined_call_operand.hbm [shape: f32[128,128], index: 9, kind: input, shape index: {}]   ;;  %s5703_s10 = inlined_call_operand.vmem [shape: f32[1,128], index: 10, kind: input, shape index: {}]   ;;  %s5704_s11 = inlined_call_operand.vmem [shape: f32[1,128], index: 11, kind: input, shape index: {}]   ;;  %s5705_s12 = inlined_call_operand.vmem [shape: f32[1,128], index: 12, kind: input, shape index: {}]   ;;  %s5706_s13 = inlined_call_operand.hbm [shape: f32[128,128], index: 13, kind: input, shape index: {}]   ;;  %s5707_s14 = inlined_call_operand.vmem [shape: f32[1,128], index: 14, kind: input, shape index: {}]   ;;  %s5708_s15 = inlined_call_operand.hbm [shape: f32[128,256], index: 15, kind: input, shape index: {}]   ;;  %s5709_s16 = inlined_call_operand.vmem [shape: f32[1,256], index: 16, kind: input, shape index: {}]   ;;  %s5710_s17 = inlined_call_operand.hbm [shape: f32[128,128], index: 17, kind: input, shape index: {}]   ;;  %s5711_s18 = inlined_call_operand.vmem [shape: f32[1,128], index: 18, kind: input, shape index: {}]   ;;  %s5712_s19 = inlined_call_operand.vmem [shape: f32[1,128], index: 19, kind: input, shape index: {}]   ;;  %s5713_s20 = inlined_call_operand.vmem [shape: f32[1,128], index: 20, kind: input, shape index: {}]   ;;  %s5714_s21 = inlined_call_operand.hbm [shape: f32[128,256], index: 21, kind: input, shape index: {}]   ;;  %s5715_s22 = inlined_call_operand.vmem [shape: f32[1,256], index: 22, kind: input, shape index: {}]   ;;  %s5716_s23 = inlined_call_operand.hbm [shape: f32[256,128], index: 23, kind: input, shape index: {}]   ;;  %s5717_s24 = inlined_call_operand.vmem [shape: f32[1,128], index: 24, kind: input, shape index: {}]   ;;  %s5718_s25 = inlined_call_operand.hbm [shape: f32[2,8,128], index: 25, kind: output, shape index: {}]  }
   0x1   :  { %5756 = sst [smem:[#allocation34_spill]] %s5693_s0 }
   0x2   :  { %5757 = sst [smem:[#allocation35_spill]] %s5694_s1 }
   0x3   :  { %5758 = sst [smem:[#allocation36_spill]] %s5695_s2 }
   0x4   :  { %5759 = sst [smem:[#allocation37_spill]] %s5696_s3 }
   0x5   :  { %5760 = sst [smem:[#allocation38_spill]] %s5697_s4 }
   0x6   :  { %5761 = sst [smem:[#allocation39_spill]] %s5698_s5 }
   0x7   :  { %5762 = sst [smem:[#allocation40_spill]] %s5699_s6 }
   0x8   :  { %5763 = sst [smem:[#allocation41_spill]] %s5700_s7 }
   0x9   :  { %5764 = sst [smem:[#allocation42_spill]] %s5701_s8 }
   0xa   :  { %5765 = sst [smem:[#allocation43_spill]] %s5702_s9 }
   0xb   :  { %5766 = sst [smem:[#allocation44_spill]] %s5703_s10 }
   0xc   :  { %5767 = sst [smem:[#allocation45_spill]] %s5704_s11 }
   0xd   :  { %5768 = sst [smem:[#allocation46_spill]] %s5705_s12 }
   0xe   :  { %5769 = sst [smem:[#allocation47_spill]] %s5707_s14 }
   0xf   :  { %5770 = sst [smem:[#allocation48_spill]] %s5708_s15 }
  0x10   :  { %5771 = sst [smem:[#allocation49_spill]] %s5709_s16 }
  0x11   :  { %5772 = sst [smem:[#allocation50_spill]] %s5711_s18 }
  0x12   :  { %5773 = sst [smem:[#allocation51_spill]] %s5712_s19 }
  0x13   :  { %5774 = sst [smem:[#allocation52_spill]] %s5713_s20 }
  0x14   :  { %5775 = sst [smem:[#allocation53_spill]] %s5714_s21 }
  0x15   :  { %5776 = sst [smem:[#allocation54_spill]] %s5715_s22 }
  0x16   :  { %5777 = sst [smem:[#allocation55_spill]] %s5717_s24 }
  0x17   :  { %5778 = sst [smem:[#allocation56_spill]] %s5718_s25 }
  0x18   :  { %30 = vsyncpa [#allocation3], 0 }
  0x19   :  { %32 = vsyncpa [#allocation3 + $0x1], 0 }
  0x1a   :  { %33 = vsyncpa [#allocation6], 0 }
  0x1b   :  { %35 = vsyncpa [#allocation6 + $0x1], 0 }
  0x1c   :  { %36 = vsyncpa [#allocation9], 0 }
  0x1d   :  { %37 = vsyncpa [#allocation12], 0 }
  0x1e   :  { %38 = vsyncpa [#allocation15], 0 }
  0x1f   :  { %39 = vsyncpa [#allocation18], 0 }
  0x20   :  { %40 = vsyncpa [#allocation4], 0 }
  0x21   :  { %42 = vsyncpa [#allocation4 + $0x1], 0  ;;  %s4949_s29 = smov 0   ;;  %s4951_s2 = smov 0  }
  0x22   :  { %s4953_s6 = smov 0   ;;  %s4955_s30 = smov 0  }
  0x23 LB: > { %5779 = sst [smem:[#allocation28_spill]] %s4783_s29  ;;  %s4797_s7 = smov [#allocation8]   ;;  %s4795_s30 = sphi %s4955_s30, %s5845_s30   ;;  %s4791_s6 = sphi %s4953_s6, %s5847_s6   ;;  %s4787_s2 = sphi %s4951_s2, %s5849_s2   ;;  %s4783_s29 = sphi %s4949_s29, %s5848_s29  }
  0x24   : > { %5780 = sst [smem:[#allocation29_spill]] %s4791_s6  ;;  %s637_s3 = sshll.u32 %s4797_s7, 4  ;;  %s4975_s3 = int_to_ptr.vmem [resolvable:$true] %s637_s3 }
  0x25   : > { %s4970_s26 = sadd.s32 4294967295, %s4795_s30   ;;  %p3475_p0 = scmp.ge.s32.totalorder %s4795_s30, 1 }
  0x26   : > { %p5728_p1 = scmp.eq.s32.totalorder %s4970_s26, 0  ;;  %p619_p2 = scmp.lt.s32.totalorder %s4795_s30, 3 }
  0x27   : > { %s4798_s27 = smov [#allocation11]   ;;  %s4799_s28 = smov [#allocation14]  }
  0x28   : > { %p4977_p3 = pnand %p3475_p0, %p619_p2  ;;  %s669_s4 = sshll.u32 %s4798_s27, 4  ;;  %s4990_s4 = int_to_ptr.vmem [resolvable:$true] %s669_s4 }
  0x29   : > { %s4992_s9 = sshll.u32 %s4799_s28, 4  ;;  %s5783_s7 = sld [smem:[#allocation39_spill]]  ;;  %s708_s9 = int_to_ptr.vmem [resolvable:$true] %s4992_s9 }
  0x2a   : > { %s5781_s1 = scalar_select %p4977_p3, 1, 0 }
  0x2b   : > { %p4220_p5 = pneg %p4977_p3 }
  0x2d   : > { %p4986_p6 = pnand %p4220_p5, %p5728_p1 }
  0x2f   : > { %s5782_s8 = scalar_select %p4986_p6, 1, 0 }
  0x30   : > { %s4395_s25 = scalar_lea.hbm %s5783_s7, 4096  ;;  %p5002_p8 = pneg %p4986_p6 }
  0x31   : > { %p4396_p7 = scmp.ne.s32.totalorder %s5783_s7, %s4395_s25  ;;  %p4402_p11 = scmp.lt.u32.totalorder %s4395_s25, %s5783_s7 }
  0x32   : > { %s5784_s20 = scalar_select %p5002_p8, 1, 0 }
  0x33   : > { %p4398_p9 = pnand %p5002_p8, %p4396_p7 }
  0x35   : > { %p4399_p10 = pneg %p4398_p9 }
  0x37   : > { %p4404_p12 = pnand %p4402_p11, %p4399_p10 }
  0x39   : > { %4407 = shalt.err (!%p4404_p12)
}
  0x3a   : > { %s4408_s22 = scalar_lea.vmem %s4975_s3, 4096  ;;  %p4416_p5 = scmp.lt.s32.totalorder %s4975_s3, %s4975_s3 }
  0x3b   : > { %p4409_p13 = scmp.ne.s32.totalorder %s4975_s3, %s4408_s22  ;;  %p4417_p4 = scmp.lt.s32.totalorder %s4408_s22, %s4408_s22 }
  0x3d   : > { %p4411_p0 = pnand %p4409_p13, %p5002_p8  ;;  %p4418_p7 = por %p4417_p4, %p4416_p5 }
  0x3f   : > { %p4412_p2 = pneg %p4411_p0 }
  0x41   : > { %p4419_p9 = pnand %p4418_p7, %p4412_p2 }
  0x43   : > { %4422 = shalt.err (!%p4419_p9)
}
  0x44   : > { %s5726_s24 = smov 256   ;;  %s4801_s25 = smov 16  }
  0x45   : > { %4223 = dma.hbm_to_vmem [thread:$0]  (!%p4986_p6), %s5783_s7, 4096, %s4975_s3, [#allocation9], %s5726_s24, %s5726_s24, %s4801_s25  }
  0x46   : > { %s5785_s19 = sld [smem:[#allocation43_spill]] }
  0x4c   : > { %s4423_s22 = scalar_lea.hbm %s5785_s19, 2048 }
  0x4d   : > { %p4424_p4 = scmp.ne.s32.totalorder %s5785_s19, %s4423_s22  ;;  %p4430_p12 = scmp.lt.u32.totalorder %s4423_s22, %s5785_s19 }
  0x4f   : > { %p4426_p10 = pnand %p4424_p4, %p5002_p8 }
  0x51   : > { %p4427_p11 = pneg %p4426_p10 }
  0x53   : > { %p4432_p13 = pnand %p4430_p12, %p4427_p11 }
  0x55   : > { %4435 = shalt.err (!%p4432_p13)
}
  0x56   : > { %s4436_s3 = scalar_lea.vmem %s4990_s4, 2048  ;;  %p4444_p7 = scmp.lt.s32.totalorder %s4990_s4, %s4990_s4 }
  0x57   : > { %p4437_p0 = scmp.ne.s32.totalorder %s4990_s4, %s4436_s3  ;;  %p4445_p9 = scmp.lt.s32.totalorder %s4436_s3, %s4436_s3 }
  0x59   : > { %p4439_p2 = pnand %p4437_p0, %p5002_p8  ;;  %p4446_p4 = por %p4445_p9, %p4444_p7 }
  0x5b   : > { %p4440_p5 = pneg %p4439_p2 }
  0x5d   : > { %p4447_p10 = pnand %p4446_p4, %p4440_p5 }
  0x5f   : > { %4450 = shalt.err (!%p4447_p10)
}
  0x60   : > { %s5730_s14 = smov 128   ;;  %s5732_s12 = smov 8  }
  0x61   : > { %4229 = dma.hbm_to_vmem [thread:$0]  (!%p4986_p6), %s5785_s19, 2048, %s4990_s4, [#allocation12], %s5730_s14, %s5730_s14, %s5732_s12  }
  0x62   : > { %s5786_s15 = sld [smem:[#allocation48_spill]] }
  0x68   : > { %s4451_s27 = scalar_lea.hbm %s5786_s15, 4096 }
  0x69   : > { %p4452_p11 = scmp.ne.s32.totalorder %s5786_s15, %s4451_s27  ;;  %p4458_p0 = scmp.lt.u32.totalorder %s4451_s27, %s5786_s15 }
  0x6b   : > { %p4454_p12 = pnand %p4452_p11, %p5002_p8 }
  0x6d   : > { %p4455_p13 = pneg %p4454_p12 }
  0x6f   : > { %p4460_p2 = pnand %p4458_p0, %p4455_p13 }
  0x71   : > { %4463 = shalt.err (!%p4460_p2)
}
  0x72   : > { %s4464_s16 = scalar_lea.vmem %s708_s9, 4096  ;;  %p4472_p4 = scmp.lt.s32.totalorder %s708_s9, %s708_s9 }
  0x73   : > { %p4465_p5 = scmp.ne.s32.totalorder %s708_s9, %s4464_s16  ;;  %p4473_p10 = scmp.lt.s32.totalorder %s4464_s16, %s4464_s16 }
  0x75   : > { %p4467_p7 = pnand %p4465_p5, %p5002_p8  ;;  %p4474_p1 = por %p4473_p10, %p4472_p4 }
  0x77   : > { %p4468_p9 = pneg %p4467_p7 }
  0x79   : > { %p4475_p3 = pnand %p4474_p1, %p4468_p9 }
  0x7b   : > { %4478 = shalt.err (!%p4475_p3)
}
  0x7c   : > { %s5787_s4 = smov 256   ;;  %s4804_s5 = smov [#allocation17]  }
  0x7d   : > { %4235 = dma.hbm_to_vmem [thread:$0]  (!%p4986_p6), %s5786_s15, 4096, %s708_s9, [#allocation15], %s5787_s4, %s5787_s4, %s4801_s25  }
  0x7e   : > { %s745_s0 = sshll.u32 %s4804_s5, 4  ;;  %s5788_s21 = sld [smem:[#allocation53_spill]]  ;;  %s746_s0 = int_to_ptr.vmem [resolvable:$true] %s745_s0 }
  0x84   : > { %s4479_s22 = scalar_lea.hbm %s5788_s21, 4096 }
  0x85   : > { %p4480_p1 = scmp.ne.s32.totalorder %s5788_s21, %s4479_s22  ;;  %p4486_p12 = scmp.lt.u32.totalorder %s4479_s22, %s5788_s21 }
  0x87   : > { %p4482_p3 = pnand %p4480_p1, %p5002_p8 }
  0x89   : > { %p4483_p11 = pneg %p4482_p3 }
  0x8b   : > { %p4488_p13 = pnand %p4486_p12, %p4483_p11 }
  0x8d   : > { %4491 = shalt.err (!%p4488_p13)
}
  0x8e   : > { %s4492_s9 = scalar_lea.vmem %s746_s0, 4096  ;;  %p4500_p7 = scmp.lt.s32.totalorder %s746_s0, %s746_s0 }
  0x8f   : > { %p4493_p0 = scmp.ne.s32.totalorder %s746_s0, %s4492_s9  ;;  %p4501_p9 = scmp.lt.s32.totalorder %s4492_s9, %s4492_s9 }
  0x91   : > { %p4495_p2 = pnand %p4493_p0, %p5002_p8  ;;  %p4502_p4 = por %p4501_p9, %p4500_p7 }
  0x93   : > { %p4496_p5 = pneg %p4495_p2 }
  0x95   : > { %p4503_p10 = pnand %p4502_p4, %p4496_p5 }
  0x97   : > { %4506 = shalt.err (!%p4503_p10)
}
  0x98   : > { %4241 = dma.hbm_to_vmem [thread:$0]  (!%p4986_p6), %s5788_s21, 4096, %s746_s0, [#allocation18], %s5787_s4, %s5787_s4, %s4801_s25  }
  0x99   : > { %s3474_s24 = sadd.s32 4294967294, %s4795_s30   ;;  %s5097_s18 = sadd.s32 1, %s4795_s30  }
  0x9a   : > { %5789 = sst [smem:[#allocation30_spill]] %s5097_s18  ;;  %s52_s5 = ssub.s32 %s4795_s30, %s5097_s18 }
  0x9b   : > { %s55_s27 = sadd.s32 1, %s4791_s6  ;;  %p53_p1 = scmp.eq.s32.totalorder %s52_s5, 0 }
  0x9c   : > { %p62_p3 = scmp.ne.s32.totalorder %s4791_s6, %s4787_s2  ;;  %p63_p11 = scmp.eq.s32.totalorder %s4795_s30, 0 }
  0x9d   : > { %p68_p12 = scmp.ne.s32.totalorder %s4787_s2, %s4783_s29  ;;  %p5791_p0 = scmp.eq.s32.totalorder %s4970_s26, 0 }
  0x9e   : > { %s5108_s28 = scalar_select %p53_p1, %s4791_s6, %s55_s27  }
  0x9f   : > { %p64_p13 = por %p63_p11, %p62_p3  ;;  %p5112_p2 = por %p5791_p0, %p68_p12 }
  0xa0   : > { %5790 = sst [smem:[#allocation31_spill]] %s5108_s28  ;;  %p606_p5 = scmp.eq.s32.totalorder %s4970_s26, 1 }
  0xa1   : > { %s5792_s22 = scalar_select %p5112_p2, 1, 0 }
  0xa2   : > { %p612_p7 = scmp.eq.s32.totalorder %s3474_s24, 1  ;;  %p4267_p9 = scmp.lt.s32.totalorder %s4795_s30, 2 }
  0xa3   : > { %s5119_s25 = sand.u32 1, %s4791_s6   ;;  %p5121_p4 = por %p606_p5, %p62_p3 }
  0xa4   : > { %p5125_p10 = por %p612_p7, %p68_p12  ;;  %s5737_s3 = sshll.u32 %s5119_s25, 3 }
  0xa5   : > { %s5793_s4 = scalar_select %p5121_p4, 1, 0 }
  0xa6   : > { %s5795_s0 = scalar_select %p5125_p10, 1, 0 }
  0xa7   : > { %5794 = sst [smem:[#allocation32_spill]] %s5793_s4  ;;  %s5738_s16 = sshll.u32 %s4795_s30, 7 }
  0xa8   : > { %5796 = sst [smem:[#allocation33_spill]] %s5795_s0  ;;  %p5131_p1 = pnand %p4267_p9, %p64_p13 }
  0xa9   : > { %s796_s14 = sand.u32 1, %s4795_s30   ;;  %s5798_s5 = sld [smem:[#allocation35_spill]] }
  0xaa   : > { %s5797_s9 = scalar_select %p5131_p1, 1, 0 }
  0xab   : > { %s800_s7 = scalar_lea.vmem [#allocation5], %s5737_s3  ;;  %s3489_s19 = sshll.u32 %s5119_s25, 4 }
  0xac   : > { %s807_s15 = sshll.u32 %s800_s7, 4  ;;  %s5148_s21 = scalar_lea.sflag [#allocation6], %s796_s14  ;;  %s5146_s15 = int_to_ptr.vmem [resolvable:$true] %s807_s15 }
  0xad   : > { %p5154_p11 = pneg %p5131_p1 }
  0xaf   : > { %s5141_s27 = scalar_lea.hbm %s5798_s5, %s5738_s16  ;;  %s4512_s7 = scalar_lea.hbm %s5798_s5, 256 }
  0xb0   : > { %s4507_s28 = scalar_lea.hbm %s5141_s27, 128  ;;  %p4513_p0 = scmp.lt.u32.totalorder %s5141_s27, %s5798_s5 }
  0xb1   : > { %p4508_p3 = scmp.ne.s32.totalorder %s5141_s27, %s4507_s28  ;;  %p4514_p5 = scmp.lt.u32.totalorder %s4512_s7, %s4507_s28 }
  0xb2   : > { %s5799_s6 = scalar_select %p5154_p11, 1, 0 }
  0xb3   : > { %p4510_p12 = pnand %p5154_p11, %p4508_p3  ;;  %p4515_p7 = por %p4514_p5, %p4513_p0 }
  0xb4   : > { %p4516_p9 = scmp.lt.u32.totalorder %s4507_s28, %s5141_s27 }
  0xb5   : > { %p4511_p13 = pneg %p4510_p12 }
  0xb6   : > { %p4517_p10 = por %p4516_p9, %p4515_p7 }
  0xb8   : > { %p4518_p4 = pnand %p4517_p10, %p4511_p13 }
  0xba   : > { %4521 = shalt.err (!%p4518_p4)
}
  0xbb   : > { %s4522_s14 = scalar_lea.vmem %s5146_s15, 128  ;;  %s4805_s12 = smov [#allocation5]  }
  0xbc   : > { %p4523_p3 = scmp.ne.s32.totalorder %s5146_s15, %s4522_s14  ;;  %s4527_s24 = sshll.u32 %s4805_s12, 4  ;;  %s4528_s24 = int_to_ptr.vmem [resolvable:$false] %s4527_s24 }
  0xbd   : > { %s4529_s3 = scalar_lea.vmem %s4528_s24, 256  ;;  %p4530_p6 = scmp.lt.s32.totalorder %s5146_s15, %s4528_s24 }
  0xbe   : > { %p4525_p12 = pnand %p4523_p3, %p5154_p11  ;;  %p4531_p8 = scmp.lt.s32.totalorder %s4529_s3, %s4522_s14 }
  0xc0   : > { %p4526_p2 = pneg %p4525_p12  ;;  %p4532_p0 = por %p4531_p8, %p4530_p6 }
  0xc2   : > { %p4533_p5 = pnand %p4532_p0, %p4526_p2 }
  0xc4   : > { %4536 = shalt.err (!%p4533_p5)
}
  0xc5   : > { %4251 = dma.hbm_to_vmem [thread:$0]  (!%p5131_p1), %s5141_s27, 128, %s5146_s15, %s5148_s21  }
  0xc6   : > { %s818_s28 = scalar_lea.vmem [#allocation7], %s3489_s19  ;;  %s4806_s7 = smov [#allocation10]  }
  0xc7   : > { %s825_s16 = sshll.u32 %s818_s28, 4  ;;  %s653_s12 = sshll.u32 %s4806_s7, 4  ;;  %s5180_s16 = int_to_ptr.vmem [resolvable:$true] %s825_s16  ;;  %s654_s12 = int_to_ptr.vmem [resolvable:$true] %s653_s12 }
  0xc8   : > { %s5800_s3 = sld [smem:[#allocation41_spill]]  ;;  %p5801_p8 = scmp.ne.s32.totalorder %s5784_s20, 0 }
  0xce   : > { %s4537_s5 = scalar_lea.hbm %s5800_s3, 2048 }
  0xcf   : > { %p4538_p6 = scmp.ne.s32.totalorder %s5800_s3, %s4537_s5  ;;  %p4544_p10 = scmp.lt.u32.totalorder %s4537_s5, %s5800_s3 }
  0xd1   : > { %p4540_p2 = pnand %p4538_p6, %p5801_p8 }
  0xd3   : > { %p4541_p4 = pneg %p4540_p2 }
  0xd5   : > { %p4546_p13 = pnand %p4544_p10, %p4541_p4 }
  0xd7   : > { %4549 = shalt.err (!%p4546_p13)
}
  0xd8   : > { %s4550_s19 = scalar_lea.vmem %s654_s12, 2048  ;;  %p4558_p12 = scmp.lt.s32.totalorder %s654_s12, %s654_s12 }
  0xd9   : > { %p4551_p7 = scmp.ne.s32.totalorder %s654_s12, %s4550_s19  ;;  %p4559_p0 = scmp.lt.s32.totalorder %s4550_s19, %s4550_s19 }
  0xdb   : > { %p4553_p9 = pnand %p4551_p7, %p5801_p8  ;;  %p4560_p5 = por %p4559_p0, %p4558_p12 }
  0xdd   : > { %p4554_p3 = pneg %p4553_p9 }
  0xdf   : > { %p4561_p1 = pnand %p4560_p5, %p4554_p3 }
  0xe1   : > { %4564 = shalt.err (!%p4561_p1)
}
  0xe2   : > { %p5802_p6 = scmp.ne.s32.totalorder %s5782_s8, 0  ;;  %s5803_s18 = smov 8  }
  0xe3   : > { %s5804_s0 = smov 128   ;;  %s4807_s7 = smov [#allocation13]  }
  0xe4   : > { %4226 = dma.hbm_to_vmem [thread:$0]  (!%p5802_p6), %s5800_s3, 2048, %s654_s12, [#allocation9], %s5804_s0, %s5804_s0, %s5803_s18  }
  0xe5   : > { %s691_s14 = sshll.u32 %s4807_s7, 4  ;;  %s4808_s24 = smov [#allocation16]   ;;  %s692_s14 = int_to_ptr.vmem [resolvable:$true] %s691_s14 }
  0xe6   : > { %s723_s15 = sshll.u32 %s4808_s24, 4  ;;  %s4565_s29 = scalar_lea.hbm %s5706_s13, 2048  ;;  %s724_s15 = int_to_ptr.vmem [resolvable:$true] %s723_s15 }
  0xe7   : > { %p4566_p1 = scmp.ne.s32.totalorder %s5706_s13, %s4565_s29  ;;  %p4572_p10 = scmp.lt.u32.totalorder %s4565_s29, %s5706_s13 }
  0xe9   : > { %p4568_p2 = pnand %p4566_p1, %p5801_p8 }
  0xeb   : > { %p4569_p4 = pneg %p4568_p2 }
  0xed   : > { %p4574_p13 = pnand %p4572_p10, %p4569_p4 }
  0xef   : > { %4577 = shalt.err (!%p4574_p13)
}
  0xf0   : > { %s4578_s12 = scalar_lea.vmem %s692_s14, 2048  ;;  %p4586_p12 = scmp.lt.s32.totalorder %s692_s14, %s692_s14 }
  0xf1   : > { %p4579_p7 = scmp.ne.s32.totalorder %s692_s14, %s4578_s12  ;;  %p4587_p0 = scmp.lt.s32.totalorder %s4578_s12, %s4578_s12 }
  0xf3   : > { %p4581_p9 = pnand %p4579_p7, %p5801_p8  ;;  %p4588_p5 = por %p4587_p0, %p4586_p12 }
  0xf5   : > { %p4582_p3 = pneg %p4581_p9 }
  0xf7   : > { %p4589_p11 = pnand %p4588_p5, %p4582_p3 }
  0xf9   : > { %4592 = shalt.err (!%p4589_p11)
}
  0xfa   : > { %4232 = dma.hbm_to_vmem [thread:$0]  (!%p5802_p6), %s5706_s13, 2048, %s692_s14, [#allocation12], %s5804_s0, %s5804_s0, %s5803_s18  }
  0xfb   : > { %s4593_s5 = scalar_lea.hbm %s5710_s17, 2048 }
  0xfc   : > { %p4594_p1 = scmp.ne.s32.totalorder %s5710_s17, %s4593_s5  ;;  %p4600_p4 = scmp.lt.u32.totalorder %s4593_s5, %s5710_s17 }
  0xfe   : > { %p4596_p11 = pnand %p4594_p1, %p5801_p8 }
 0x100   : > { %p4597_p2 = pneg %p4596_p11 }
 0x102   : > { %p4602_p10 = pnand %p4600_p4, %p4597_p2 }
 0x104   : > { %4605 = shalt.err (!%p4602_p10)
}
 0x105   : > { %s4606_s28 = scalar_lea.vmem %s724_s15, 2048  ;;  %p4614_p3 = scmp.lt.s32.totalorder %s724_s15, %s724_s15 }
 0x106   : > { %p4607_p13 = scmp.ne.s32.totalorder %s724_s15, %s4606_s28  ;;  %p4615_p12 = scmp.lt.s32.totalorder %s4606_s28, %s4606_s28 }
 0x108   : > { %p4609_p7 = pnand %p4607_p13, %p5801_p8  ;;  %p4616_p0 = por %p4615_p12, %p4614_p3 }
 0x10a   : > { %p4610_p9 = pneg %p4609_p7 }
 0x10c   : > { %p4617_p5 = pnand %p4616_p0, %p4610_p9 }
 0x10e   : > { %4620 = shalt.err (!%p4617_p5)
}
 0x10f   : > { %4238 = dma.hbm_to_vmem [thread:$0]  (!%p5802_p6), %s5710_s17, 2048, %s724_s15, [#allocation15], %s5804_s0, %s5804_s0, %s5803_s18  }
 0x110   : > { %s4809_s10 = smov [#allocation19]   ;;  %s4621_s5 = scalar_lea.hbm %s5716_s23, 4096 }
 0x111   : > { %s761_s11 = sshll.u32 %s4809_s10, 4  ;;  %p4622_p1 = scmp.ne.s32.totalorder %s5716_s23, %s4621_s5  ;;  %s762_s11 = int_to_ptr.vmem [resolvable:$true] %s761_s11 }
 0x112   : > { %p4628_p4 = scmp.lt.u32.totalorder %s4621_s5, %s5716_s23 }
 0x113   : > { %p4624_p11 = pnand %p4622_p1, %p5801_p8 }
 0x115   : > { %p4625_p2 = pneg %p4624_p11 }
 0x117   : > { %p4630_p10 = pnand %p4628_p4, %p4625_p2 }
 0x119   : > { %4633 = shalt.err (!%p4630_p10)
}
 0x11a   : > { %s4634_s15 = scalar_lea.vmem %s762_s11, 4096  ;;  %p4642_p3 = scmp.lt.s32.totalorder %s762_s11, %s762_s11 }
 0x11b   : > { %p4635_p13 = scmp.ne.s32.totalorder %s762_s11, %s4634_s15  ;;  %p4643_p12 = scmp.lt.s32.totalorder %s4634_s15, %s4634_s15 }
 0x11d   : > { %p4637_p7 = pnand %p4635_p13, %p5801_p8  ;;  %p4644_p0 = por %p4643_p12, %p4642_p3 }
 0x11f   : > { %p4638_p9 = pneg %p4637_p7 }
 0x121   : > { %p4645_p5 = pnand %p4644_p0, %p4638_p9 }
 0x123   : > { %4648 = shalt.err (!%p4645_p5)
}
 0x124   : > { %4244 = dma.hbm_to_vmem [thread:$0]  (!%p5802_p6), %s5716_s23, 4096, %s762_s11, [#allocation18], %s5804_s0, %s5804_s0, %s5803_s18  }
 0x125   : > { %s5805_s20 = sshll.u32 %s4795_s30, 7  ;;  %s5806_s29 = sld [smem:[#allocation34_spill]] }
 0x126   : > { %s5808_s7 = sshll.u32 %s5119_s25, 3  ;;  %s3548_s27 = sshll.u32 %s4795_s30, 8 }
 0x127   : > { %s782_s8 = scalar_lea.vmem [#allocation2], %s5808_s7  ;;  %s779_s19 = scalar_lea.sflag [#allocation3], %s5119_s25 }
 0x128   : > { %s789_s24 = sshll.u32 %s782_s8, 4  ;;  %p5809_p6 = scmp.ne.s32.totalorder %s5799_s6, 0  ;;  %s5275_s24 = int_to_ptr.vmem [resolvable:$true] %s789_s24 }
 0x12b   : > { %s5807_s4 = smov %s5806_s29  ;;  %s5271_s5 = scalar_lea.hbm %s5806_s29, %s5805_s20 }
 0x12c   : > { %s4649_s15 = scalar_lea.hbm %s5271_s5, 128  ;;  %s4654_s14 = scalar_lea.hbm %s5807_s4, 256 }
 0x12d   : > { %p4650_p8 = scmp.ne.s32.totalorder %s5271_s5, %s4649_s15  ;;  %p4655_p2 = scmp.lt.u32.totalorder %s5271_s5, %s5807_s4 }
 0x12e   : > { %p4656_p4 = scmp.lt.u32.totalorder %s4654_s14, %s4649_s15  ;;  %p4658_p13 = scmp.lt.u32.totalorder %s4649_s15, %s5271_s5 }
 0x12f   : > { %p4652_p1 = pnand %p4650_p8, %p5809_p6 }
 0x130   : > { %p4657_p10 = por %p4656_p4, %p4655_p2 }
 0x131   : > { %p4653_p11 = pneg %p4652_p1 }
 0x132   : > { %p4659_p7 = por %p4658_p13, %p4657_p10 }
 0x134   : > { %p4660_p9 = pnand %p4659_p7, %p4653_p11 }
 0x136   : > { %4663 = shalt.err (!%p4660_p9)
}
 0x137   : > { %s4664_s25 = scalar_lea.vmem %s5275_s24, 128  ;;  %s4810_s10 = smov [#allocation2]  }
 0x138   : > { %p4665_p3 = scmp.ne.s32.totalorder %s5275_s24, %s4664_s25  ;;  %s4669_s29 = sshll.u32 %s4810_s10, 4  ;;  %s4670_s29 = int_to_ptr.vmem [resolvable:$false] %s4669_s29 }
 0x139   : > { %s4671_s7 = scalar_lea.vmem %s4670_s29, 256  ;;  %p4672_p5 = scmp.lt.s32.totalorder %s5275_s24, %s4670_s29 }
 0x13a   : > { %p4667_p12 = pnand %p4665_p3, %p5809_p6  ;;  %p4673_p8 = scmp.lt.s32.totalorder %s4671_s7, %s4664_s25 }
 0x13c   : > { %p4668_p0 = pneg %p4667_p12  ;;  %p4674_p1 = por %p4673_p8, %p4672_p5 }
 0x13e   : > { %p4675_p2 = pnand %p4674_p1, %p4668_p0 }
 0x140   : > { %4678 = shalt.err (!%p4675_p2)
}
 0x141   : > { %p5810_p11 = scmp.ne.s32.totalorder %s5797_s9, 0  ;;  %s5811_s11 = sld [smem:[#allocation36_spill]] }
 0x143   : > { %4248 = dma.hbm_to_vmem [thread:$0]  (!%p5810_p11), %s5271_s5, 128, %s5275_s24, %s779_s19  }
 0x147   : > { %s5305_s28 = scalar_lea.hbm %s5811_s11, %s3548_s27  ;;  %s4684_s25 = scalar_lea.hbm %s5811_s11, 512 }
 0x148   : > { %s4679_s14 = scalar_lea.hbm %s5305_s28, 256  ;;  %p4685_p7 = scmp.lt.u32.totalorder %s5305_s28, %s5811_s11 }
 0x149   : > { %p4680_p4 = scmp.ne.s32.totalorder %s5305_s28, %s4679_s14  ;;  %p4686_p9 = scmp.lt.u32.totalorder %s4684_s25, %s4679_s14 }
 0x14a   : > { %p4688_p12 = scmp.lt.u32.totalorder %s4679_s14, %s5305_s28 }
 0x14b   : > { %p4682_p10 = pnand %p4680_p4, %p5809_p6  ;;  %p4687_p3 = por %p4686_p9, %p4685_p7 }
 0x14d   : > { %p4683_p13 = pneg %p4682_p10  ;;  %p4689_p0 = por %p4688_p12, %p4687_p3 }
 0x14f   : > { %p4690_p5 = pnand %p4689_p0, %p4683_p13 }
 0x151   : > { %4693 = shalt.err (!%p4690_p5)
}
 0x152   : > { %s4694_s27 = scalar_lea.vmem %s5180_s16, 256  ;;  %s4811_s19 = smov [#allocation7]  }
 0x153   : > { %p4695_p8 = scmp.ne.s32.totalorder %s5180_s16, %s4694_s27  ;;  %s4699_s10 = sshll.u32 %s4811_s19, 4  ;;  %s4700_s10 = int_to_ptr.vmem [resolvable:$false] %s4699_s10 }
 0x154   : > { %s4701_s29 = scalar_lea.vmem %s4700_s10, 512  ;;  %p4702_p4 = scmp.lt.s32.totalorder %s5180_s16, %s4700_s10 }
 0x155   : > { %p4697_p1 = pnand %p4695_p8, %p5809_p6  ;;  %p4703_p10 = scmp.lt.s32.totalorder %s4701_s29, %s4694_s27 }
 0x157   : > { %p4698_p2 = pneg %p4697_p1  ;;  %p4704_p7 = por %p4703_p10, %p4702_p4 }
 0x159   : > { %p4705_p9 = pnand %p4704_p7, %p4698_p2 }
 0x15b   : > { %4708 = shalt.err (!%p4705_p9)
}
 0x15c   : > { %4254 = dma.hbm_to_vmem [thread:$0]  (!%p5810_p11), %s5305_s28, 256, %s5180_s16, %s5148_s21, %s5804_s0, %s5804_s0, %s5803_s18  }
 0x15d   : > { %p5812_p6 = scmp.ne.s32.totalorder %s5781_s1, 0 }
 0x15e   : > { %s5335_s6 = sand.u32 (!%p5812_p6), 1, %s4787_s2   ;;  %p5813_p13 = scmp.ne.s32.totalorder (!%p5812_p6), %s5792_s22, 0 }
 0x15f   : > { %837 = sbr.rel (%p5812_p6) target bundleno = 5328 (0x14d0), region = 120  ;;  %s5338_s7 = sshll.u32 (!%p5812_p6), %s5335_s6, 3 }
 0x160   : > { %s840_s9 = scalar_lea.sflag (!%p5812_p6), [#allocation3], %s5335_s6  ;;  %s843_s8 = scalar_lea.vmem (!%p5812_p6), [#allocation2], %s5338_s7 }
 0x166   : > { %4754 = dma.done.wait (%p5813_p13), %s840_s9, 128  }
 0x167   : > { %4756 = vsyncadd (%p5813_p13), %s840_s9, 4294967168  ;;  %s848_s21 = sand.u32 1, %s4970_s26   ;;  %s852_s16 = scalar_lea.vmem [#allocation5], %s5338_s7 }
 0x168   : > { %s849_s1 = scalar_lea.sflag [#allocation6], %s848_s21 }
 0x169   : > { %4758 = dma.done.wait (%p5813_p13), %s849_s1, 384  }
 0x16a   : > { %4760 = vsyncadd (%p5813_p13), %s849_s1, 4294966912  ;;  %s3495_s18 = sshll.u32 %s5335_s6, 4  ;;  %p5814_p11 = scmp.eq.s32.totalorder %s4970_s26, 0 }
 0x16b   : > { %s5353_s0 = scalar_lea.vmem [#allocation7], %s3495_s18 }
 0x16c   : > { %4762 = dma.done.wait (%p5814_p11), [#allocation9], 6144   ;;  %p5815_p3 = pmov %p5814_p11 }
 0x16e   : > { %4764 = vsyncadd (%p5815_p3), [#allocation9], 4294961152  ;;  %p5816_p12 = pmov %p5815_p3 }
 0x16f   : > { %p5817_p0 = pmov %p5815_p3 }
 0x170   : > { %4766 = dma.done.wait (%p5816_p12), [#allocation12], 4096  }
 0x171   : > { %4768 = vsyncadd (%p5817_p0), [#allocation12], 4294963200  ;;  %p5818_p5 = pmov %p5817_p0 }
 0x172   : > { %p5819_p8 = pmov %p5817_p0 }
 0x173   : > { %4770 = dma.done.wait (%p5818_p5), [#allocation15], 6144  }
 0x174   : > { %4772 = vsyncadd (%p5819_p8), [#allocation15], 4294961152  ;;  %p5820_p1 = pmov %p5817_p0 }
 0x175   : > { %p5821_p2 = pmov %p5817_p0 }
 0x176   : > { %4774 = dma.done.wait (%p5820_p1), [#allocation18], 8192  }
 0x177   : > { %4776 = vsyncadd (%p5821_p2), [#allocation18], 4294959104  ;;  %v4812_v0 = vmov 0.0   ;;  %v5372_v1 = vld [vmem:[%s843_s8] sm:$0xff]  ;;  %v1006_v3 = vld [vmem:[#allocation8 + $0x18] sm:$0xff]  ;;  %v4813_v48 = vmov 0.0|0.0  }
 0x178   : > { %1111 = vmatprep.mubr.f32.mxu0 %v4812_v0  ;;  %v1004_v2 = vld [vmem:[#allocation8 + $0x8] sm:$0xff]  ;;  %977 = vadd.xlane.f32.xlu0 %v5372_v1  ;;  %v1003_v5 = vld [vmem:[#allocation8] sm:$0xff]  ;;  %v1005_v6 = vld [vmem:[#allocation8 + $0x10] sm:$0xff]  ;;  %vm4814_vm0 = vmmov 0   ;;  %s5822_s28 = sld [smem:[#allocation40_spill]]  ;;  %s4815_s14 = smov 96  }
 0x179   : > { %v3928_v4 = vpack.c.bf16 %v1006_v3, %v1004_v2  ;;  %v1008_v7 = vld [vmem:[#allocation8 + $0x28] sm:$0xff]  ;;  %v3930_v8 = vpack.c.bf16 %v1005_v6, %v1003_v5  ;;  %v1010_v9 = vld [vmem:[#allocation8 + $0x38] sm:$0xff]  ;;  %v1007_v10 = vld [vmem:[#allocation8 + $0x20] sm:$0xff]  ;;  %3960 = vmatprep.subr.bf16.mxu1 %v4813_v48  ;;  %3724 = vmatprep.mubr.msk.f32.mxu1 %vm4814_vm0, %v4812_v0  ;;  %s4816_s20 = smov 32   ;;  %s4817_s12 = smov 64   ;;  %vm1211_vm1 = vcmask 261120  }
 0x17a   : > { %v1009_v11 = vld [vmem:[#allocation8 + $0x30] sm:$0xff]  ;;  %v3932_v12 = vpack.c.bf16 %v1010_v9, %v1008_v7  ;;  %v1012_v13 = vld [vmem:[#allocation8 + $0x48] sm:$0xff]  ;;  %v1014_v14 = vld [vmem:[#allocation8 + $0x58] sm:$0xff]  ;;  %s5823_s24 = sld [smem:[#allocation37_spill]]  ;;  %s5824_s10 = sld [smem:[#allocation38_spill]]  ;;  %vm1288_vm2 = vcmask 64512  }
 0x17b   : > { %3929 = vmatprep.subr.bf16.mxu0 %v3928_v4  ;;  %v3934_v15 = vpack.c.bf16 %v1009_v11, %v1007_v10  ;;  %v3936_v16 = vpack.c.bf16 %v1014_v14, %v1012_v13  ;;  %v1011_v17 = vld [vmem:[#allocation8 + $0x40] sm:$0xff]  ;;  %v1013_v18 = vld [vmem:[#allocation8 + $0x50] sm:$0xff]  ;;  %v1016_v19 = vld [vmem:[#allocation8 + $0x68] sm:$0xff]  ;;  %s5825_s8 = sld [smem:[#allocation42_spill]]  ;;  %vm1882_vm3 = vcmask 523264   ;;  %vm1884_vm4 = vcmask 785408  }
 0x17c   : > { %3931 = vmatpush1.bf16.msra.mxu0 %v3930_v8  ;;  %v1018_v20 = vld [vmem:[#allocation8 + $0x78] sm:$0xff]  ;;  %v3938_v21 = vpack.c.bf16 %v1013_v18, %v1011_v17  ;;  %v1015_v23 = vld [vmem:[#allocation8 + $0x60] sm:$0xff]  ;;  %v1017_v24 = vld [vmem:[#allocation8 + $0x70] sm:$0xff]  ;;  %s5827_s22 = sld [smem:[#allocation45_spill]]  ;;  %s5828_s25 = sld [smem:[#allocation46_spill]]  ;;  %vm2302_vm6 = vcmask 130048  }
 0x17d   : > { %3933 = vmatprep.subr.bf16.mxu0 %v3932_v12  ;;  %v3940_v22 = vpack.c.bf16 %v1018_v20, %v1016_v19  ;;  %v1020_v25 = vld [vmem:[#allocation8 + $0x88] sm:$0xff]  ;;  %v1022_v26 = vld [vmem:[#allocation8 + $0x98] sm:$0xff]  ;;  %v3942_v27 = vpack.c.bf16 %v1017_v24, %v1015_v23  ;;  %v1019_v29 = vld [vmem:[#allocation8 + $0x80] sm:$0xff]  ;;  %v1037_v19 = vlaneseq  ;;  %s5829_s27 = sld [smem:[#allocation49_spill]]  ;;  %s5832_s29 = sld [smem:[#allocation47_spill]] }
 0x17e   : > { %v3944_v28 = vpack.c.bf16 %v1022_v26, %v1020_v25  ;;  %v1021_v30 = vld [vmem:[#allocation8 + $0x90] sm:$0xff]  ;;  %v1024_v31 = vld [vmem:[#allocation8 + $0xa8] sm:$0xff]  ;;  %v1026_v32 = vld [vmem:[#allocation8 + $0xb8] sm:$0xff]  ;;  %s5833_s9 = sld [smem:[#allocation50_spill]]  ;;  %s5834_s21 = sld [smem:[#allocation51_spill]] }
 0x17f   : > { %v3946_v33 = vpack.c.bf16 %v1021_v30, %v1019_v29  ;;  %v3948_v34 = vpack.c.bf16 %v1026_v32, %v1024_v31  ;;  %v1023_v35 = vld [vmem:[#allocation8 + $0xa0] sm:$0xff]  ;;  %v1025_v36 = vld [vmem:[#allocation8 + $0xb0] sm:$0xff]  ;;  %v1028_v37 = vld [vmem:[#allocation8 + $0xc8] sm:$0xff]  ;;  %v1038_v20 = vshrl.u32 %v1037_v19, 7  ;;  %s5835_s18 = sld [smem:[#allocation52_spill]]  ;;  %s5836_s15 = sld [smem:[#allocation54_spill]] }
 0x180   : > { %3935 = vmatpush1.bf16.msra.mxu0 %v3934_v15  ;;  %v1030_v38 = vld [vmem:[#allocation8 + $0xd8] sm:$0xff]  ;;  %v3950_v39 = vpack.c.bf16 %v1025_v36, %v1023_v35  ;;  %v1027_v40 = vld [vmem:[#allocation8 + $0xc0] sm:$0xff]  ;;  %v1029_v41 = vld [vmem:[#allocation8 + $0xd0] sm:$0xff]  ;;  %s969_s19 = scalar_lea.vmem [#allocation20], %s5338_s7 }
 0x181   : > { %3937 = vmatprep.subr.bf16.mxu0 %v3936_v16  ;;  %v3952_v42 = vpack.c.bf16 %v1030_v38, %v1028_v37  ;;  %v1118_v43 = vld [vmem:[#allocation10] sm:$0xff]  ;;  %v1119_v44 = vld [vmem:[#allocation10 + $0x8] sm:$0xff]  ;;  %v1120_v45 = vld [vmem:[#allocation10 + $0x10] sm:$0xff]  ;;  %v3954_v51 = vpack.c.bf16 %v1029_v41, %v1027_v40  ;;  %v5401_v23 = vsub.s32 1, %v1038_v20 }
 0x182   : > { %v1032_v46 = vld [vmem:[#allocation8 + $0xe8] sm:$0xff]  ;;  %v1034_v47 = vld [vmem:[#allocation8 + $0xf8] sm:$0xff]  ;;  %v3961_v49 = vpack.c.bf16 %v1119_v44, %v1118_v43  ;;  %v1031_v52 = vld [vmem:[#allocation8 + $0xe0] sm:$0xff] }
 0x183   : > { %v1121_v50 = vld [vmem:[#allocation10 + $0x18] sm:$0xff]  ;;  %v3956_v54 = vpack.c.bf16 %v1034_v47, %v1032_v46  ;;  %v1033_v55 = vld [vmem:[#allocation8 + $0xf0] sm:$0xff]  ;;  %v1122_v56 = vld [vmem:[#allocation10 + $0x20] sm:$0xff] }
 0x184   : > { %3939 = vmatpush1.bf16.msra.mxu0 %v3938_v21  ;;  %3962 = vmatpush3.bf16.msra.mxu1 %v3961_v49  ;;  %v3964_v53 = vpack.c.bf16 %v1121_v50, %v1120_v45  ;;  %v1123_v57 = vld [vmem:[#allocation10 + $0x28] sm:$0xff]  ;;  %v3958_v58 = vpack.c.bf16 %v1033_v55, %v1031_v52  ;;  %v5379_v59 = vld [vmem:[%s852_s16] sm:$0xff]  ;;  %v1126_v7 = vld [vmem:[#allocation10 + $0x40] sm:$0xff]  ;;  %v5396_v21 = vsub.s32 0, %v1038_v20  ;;  %s5826_s16 = sld [smem:[#allocation44_spill]] }
 0x185   : > { %3941 = vmatprep.subr.bf16.mxu0 %v3940_v22  ;;  %3963 = vmatprep.subr.bf16.mxu1 %v4813_v48  ;;  %v3967_v60 = vpack.c.bf16 %v1123_v57, %v1122_v56  ;;  %v1124_v61 = vld [vmem:[#allocation10 + $0x30] sm:$0xff]  ;;  %v1125_v62 = vld [vmem:[#allocation10 + $0x38] sm:$0xff]  ;;  %v974_v63 = vadd.f32 %v5379_v59, %v5372_v1  ;;  %v1127_v8 = vld [vmem:[#allocation10 + $0x48] sm:$0xff] }
 0x186   : > { %v3970_v2 = vpack.c.bf16 %v1125_v62, %v1124_v61  ;;  %v3973_v9 = vpack.c.bf16 %v1127_v8, %v1126_v7  ;;  %v1128_v10 = vld [vmem:[#allocation10 + $0x50] sm:$0xff]  ;;  %v1129_v11 = vld [vmem:[#allocation10 + $0x58] sm:$0xff]  ;;  %v1130_v13 = vld [vmem:[#allocation10 + $0x60] sm:$0xff] }
 0x187   : > { %v3976_v12 = vpack.c.bf16 %v1129_v11, %v1128_v10  ;;  %v1131_v14 = vld [vmem:[#allocation10 + $0x68] sm:$0xff]  ;;  %v1132_v16 = vld [vmem:[#allocation10 + $0x70] sm:$0xff]  ;;  %v1133_v17 = vld [vmem:[#allocation10 + $0x78] sm:$0xff] }
 0x188   : > { %3943 = vmatpush1.bf16.msra.mxu0 %v3942_v27  ;;  %3965 = vmatpush3.bf16.msra.mxu1 %v3964_v53  ;;  %v3979_v15 = vpack.c.bf16 %v1131_v14, %v1130_v13  ;;  %v3982_v18 = vpack.c.bf16 %v1133_v17, %v1132_v16  ;;  %v1035_v22 = vld [vmem:[%s5822_s28] sm:$0x3]  ;;  %vm5524_vm5 = vmpackc.low %vm1211_vm1, %vm1211_vm1  ;;  %s5837_s28 = sld [smem:[#allocation32_spill]] }
 0x189   : > { %3945 = vmatprep.subr.bf16.mxu0 %v3944_v28  ;;  %3966 = vmatprep.subr.bf16.mxu1 %v4813_v48  ;;  %v1040_v24 = vrot.slane %v1035_v22, %v5396_v21  ;;  %v1044_v25 = vrot.slane %v1035_v22, %v5401_v23  ;;  %v3506_v36 = vld [vmem:[%s5824_s10] ss:$0 sm:$0xff]  ;;  %s3285_s10 = sshll.u32 %s969_s19, 4  ;;  %s5651_s10 = int_to_ptr.vmem [resolvable:$true] %s3285_s10 }
 0x18a   : > { %v3507_v41 = vld [vmem:[%s5825_s8] ss:$0 sm:$0xff]  ;;  %s4709_s8 = scalar_lea.vmem %s5651_s10, 128 }
 0x18b   : > { %p4710_p4 = scmp.ne.s32.totalorder %s5651_s10, %s4709_s8 }
 0x18c   : > { %3947 = vmatpush1.bf16.msra.mxu0 %v3946_v33  ;;  %3968 = vmatpush3.bf16.msra.mxu1 %v3967_v60 }
 0x18d   : > { %3949 = vmatprep.subr.bf16.mxu0 %v3948_v34  ;;  %3969 = vmatprep.subr.bf16.mxu1 %v4813_v48  ;;  %v3505_v34 = vld [vmem:[%s5823_s24] ss:$0 sm:$0xff]  ;;  %s5838_s24 = sld [smem:[#allocation55_spill]] }
 0x18e   : > { %p5840_p10 = scmp.ne.s32.totalorder %s5837_s28, 0 }
 0x190   : > { %3951 = vmatpush1.bf16.msra.mxu0 %v3950_v39  ;;  %3971 = vmatpush3.bf16.msra.mxu1 %v3970_v2  ;;  %p4711_p7 = pnand %p4710_p4, %p5840_p10 }
 0x191   : > { %3953 = vmatprep.subr.bf16.mxu0 %v3952_v42  ;;  %3972 = vmatprep.subr.bf16.mxu1 %v4813_v48 }
 0x192   : > { %p4712_p9 = pneg %p4711_p7 }
 0x194   : > { %3955 = vmatpush1.bf16.msra.mxu0 %v3954_v51  ;;  %3974 = vmatpush3.bf16.msra.mxu1 %v3973_v9 }
 0x195   : > { %3957 = vmatprep.subr.bf16.mxu0 %v3956_v54  ;;  %3975 = vmatprep.subr.bf16.mxu1 %v4813_v48 }
 0x198   : > { %3959 = vmatpush1.bf16.msra.mxu0 %v3958_v58  ;;  %3977 = vmatpush3.bf16.msra.mxu1 %v3976_v12 }
 0x199   : > { %3747 = vmatprep.subr.mxu0 %v4812_v0  ;;  %3978 = vmatprep.subr.bf16.mxu1 %v4813_v48 }
 0x19b   : > { %1112 = vmatmul.mubr.f32.vlgmr.msra.gmra.mrb[0].mxu0 %v974_v63 }
 0x19c   : > { %3749 = vmatprep.mubr.msk.f32.mxu0 %vm4814_vm0, %v4812_v0  ;;  %3980 = vmatpush3.bf16.msra.mxu1 %v3979_v15 }
 0x19d   : > { %3981 = vmatprep.subr.bf16.mxu1 %v4813_v48 }
 0x1a0   : > { %3983 = vmatpush3.bf16.msra.mxu1 %v3982_v18 }
 0x1a1   : > { %3727 = vmatprep.subr.mxu1 %v4812_v0 }
 0x205   : > { %v978_v3 = vpop.xlane.xlu0 %977 }
 0x206   : > { %v980_v4 = vmul.f32 0.0078125, %v978_v3 }
 0x208   : > { %v981_v5 = vsub.f32 %v5372_v1, %v980_v4 }
 0x20a   : > { %v982_v6 = vmul.f32 %v981_v5, %v981_v5 }
 0x20c   : > { %983 = vadd.xlane.f32.xlu0 %v982_v6 }
 0x26e   : > { %v1113_v26 = vpop.f32.mrb[0].mxu0 }
 0x26f   : > { %v1114_v27 = vadd.f32 %v1113_v26, %v1040_v24  ;;  %v1115_v28 = vpop.f32.mrb[1].mxu0 }
 0x270   : > { %v1116_v29 = vadd.f32 %v1115_v28, %v1044_v25  ;;  %v1886_v28 = vld [vmem:[#allocation11] sm:$0xff] }
 0x271   : > { %1373 = vrot.lane.b32.xlu0 %v1114_v27, %s4815_s14 }
 0x272   : > { %1375 = vrot.lane.b32.xlu1 %v1116_v29, %s4815_s14 }
 0x275   : > { %1704 = vrot.lane.b32.xlu0 %v1114_v27, %s4816_s20 }
 0x276   : > { %1541 = vrot.lane.b32.xlu1 %v1116_v29, %s4817_s12 }
 0x299   : > { %v984_v30 = vpop.xlane.xlu0 %983 }
 0x29a   : > { %v985_v31 = vmul.f32 0.0078125, %v984_v30  ;;  %v1888_v30 = vld [vmem:[#allocation11 + $0x10] sm:$0xff] }
 0x29c   : > { %v986_v32 = vadd.f32 1e-05, %v985_v31 }
 0x29e   : > { %4357 = vrsqrt.f32 %v986_v32  ;;  %v1889_v32 = vld [vmem:[#allocation11 + $0x18] sm:$0xff] }
 0x2a8   : > { %v4358_v33 = vpop.eup %4357 }
 0x2a9   : > { %v988_v35 = vmul.f32 %v4358_v33, %v981_v5  ;;  %v3988_v33 = vpack.c.bf16 %v1889_v32, %v1888_v30  ;;  %v2106_v32 = vld [vmem:[#allocation14 + $0x20] sm:$0xff] }
 0x2ab   : > { %v995_v37 = vmul.f32 %v3505_v34, %v988_v35  ;;  %v1890_v34 = vld [vmem:[#allocation11 + $0x20] sm:$0xff]  ;;  %v1891_v35 = vld [vmem:[#allocation11 + $0x28] sm:$0xff] }
 0x2ad   : > { %v1002_v38 = vadd.f32 %v3506_v36, %v995_v37  ;;  %v3991_v36 = vpack.c.bf16 %v1891_v35, %v1890_v34  ;;  %v1892_v37 = vld [vmem:[#allocation11 + $0x30] sm:$0xff]  ;;  %v2111_v34 = vld [vmem:[#allocation14 + $0x48] sm:$0xff]  ;;  %v2113_v35 = vld [vmem:[#allocation14 + $0x58] sm:$0xff] }
 0x2af   : > { %3725 = vmatmul.mubr.f32.vlgmr.msra.gmra.mrb[0].mxu1 %v1002_v38  ;;  %v1893_v38 = vld [vmem:[#allocation11 + $0x38] sm:$0xff] }
 0x2b0   : > { %3728 = vmatpush3.xpose.msk.msra.mxu1 %vm1211_vm1, %v1116_v29  ;;  %3729 = vmatprep.mubr.msk.f32.mxu1 %vm4814_vm0, %v4812_v0 }
 0x2b1   : > { %3732 = vmatprep.subr.mxu1 %v4812_v0 }
 0x2b3   : > { %3730 = vmatmul.mubr.msk.f32.vlgmr.msra.gmra.mrb[2].mxu1 %vm1211_vm1, %v1114_v27 }
 0x2b4   : > { %3734 = vmatprep.mubr.msk.f32.mxu1 %vm4814_vm0, %v4812_v0 }
 0x2e3   : > { %v1374_v53 = vpop.permute.xlu0 %1373 }
 0x2e4   : > { %v1376_v39 = vpop.permute.xlu1 %1375 }
 0x2e7   : > { %v1705_v55 = vpop.permute.xlu0 %1704 }
 0x2e8   : > { %v1542_v40 = vpop.permute.xlu1 %1541 }
 0x2e9   : > { %3748 = vmatpush3.xpose.msk.msra.mxu0 %vm1211_vm1, %v1542_v40  ;;  %v1894_v40 = vld [vmem:[#allocation11 + $0x40] sm:$0xff] }
 0x2ea   : > { %3757 = vmatprep.subr.mxu0 %v4812_v0 }
 0x382   : > { %v1207_v42 = vpop.f32.mrb[0].mxu1 }
 0x383   : > { %v1208_v43 = vadd.f32 %v3507_v41, %v1207_v42  ;;  %v3726_v44 = vpop.f32.mrb[1].mxu1  ;;  %v1895_v41 = vld [vmem:[#allocation11 + $0x48] sm:$0xff] }
 0x384   : > { %v3997_v42 = vpack.c.bf16 %v1895_v41, %v1894_v40  ;;  %v1897_v44 = vld [vmem:[#allocation11 + $0x58] sm:$0xff]  ;;  %v2009_v41 = vld [vmem:[#allocation13] sm:$0xff] }
 0x385   : > { %3733 = vmatpush3.msra.mxu1 %v1208_v43  ;;  %v2117_v40 = vld [vmem:[#allocation14 + $0x78] sm:$0xff] }
 0x386   : > { %v1284_v45 = vpop.f32.mrb[2].mxu1  ;;  %3737 = vmatprep.subr.mxu1 %v4812_v0 }
 0x387   : > { %v3731_v46 = vpop.f32.mrb[3].mxu1  ;;  %v1289_v47 = vsel %vm1288_vm2, %v1284_v45, -inf }
 0x388   : > { %1290 = vmax.xlane.f32.xlu1 %v1289_v47  ;;  %v1898_v47 = vld [vmem:[#allocation11 + $0x60] sm:$0xff] }
 0x399   : > { %1539 = vrot.lane.b32.xlu1 %v1114_v27, %s4817_s12 }
 0x39d   : > { %1706 = vrot.lane.b32.xlu1 %v1116_v29, %s4816_s20  ;;  %v1887_v29 = vld [vmem:[#allocation11 + $0x8] sm:$0xff] }
 0x39e   : > { %v3985_v31 = vpack.c.bf16 %v1887_v29, %v1886_v28  ;;  %v2107_v28 = vld [vmem:[#allocation14 + $0x28] sm:$0xff]  ;;  %v2109_v29 = vld [vmem:[#allocation14 + $0x38] sm:$0xff] }
 0x3a1   : > { %1626 = vrot.lane.b32.xlu1 %v1208_v43, %s4817_s12 }
 0x415   : > { %v1291_v49 = vpop.xlane.xlu1 %1290 }
 0x416   : > { %v1292_v50 = vsub.f32 %v1284_v45, %v1291_v49  ;;  %v1899_v49 = vld [vmem:[#allocation11 + $0x68] sm:$0xff] }
 0x418   : > { %v1293_v51 = vmul.f32 1.442695, %v1292_v50 }
 0x419   : > { %v1540_v52 = vpop.permute.xlu1 %1539 }
 0x41a   : > { %4359 = vpow2.f32 %v1293_v51  ;;  %3750 = vmatmul.mubr.msk.f32.vlgmr.msra.gmra.mrb[2].mxu0 %vm1211_vm1, %v1540_v52  ;;  %v4003_v51 = vpack.c.bf16 %v1899_v49, %v1898_v47  ;;  %v1900_v52 = vld [vmem:[#allocation11 + $0x70] sm:$0xff]  ;;  %v2114_v47 = vld [vmem:[#allocation14 + $0x60] sm:$0xff] }
 0x41b   : > { %3759 = vmatprep.mubr.msk.f32.mxu0 %vm4814_vm0, %v4812_v0  ;;  %v2116_v49 = vld [vmem:[#allocation14 + $0x70] sm:$0xff] }
 0x41d   : > { %v1707_v54 = vpop.permute.xlu1 %1706 }
 0x41e   : > { %3758 = vmatpush3.xpose.msk.msra.mxu0 %vm1211_vm1, %v1707_v54 }
 0x41f   : > { %3984 = vmatprep.subr.bf16.mxu0 %v4813_v48 }
 0x421   : > { %3760 = vmatmul.mubr.msk.f32.vlgmr.msra.gmra.mrb[4].mxu0 %vm1211_vm1, %v1705_v55  ;;  %v1627_v13 = vpop.permute.xlu1 %1626 }
 0x422   : > { %3799 = vmatprep.mubr.msk.f32.mxu0 %vm4814_vm0, %v4812_v0  ;;  %3986 = vmatpush3.bf16.msra.mxu0 %v3985_v31  ;;  %v4036_v31 = vpack.c.bf16 %v2109_v29, %v2107_v28  ;;  %v972_v29 = vld [vmem:[%s5353_s0] sm:$0xff] }
 0x423   : > { %3987 = vmatprep.subr.bf16.mxu0 %v4813_v48 }
 0x424   : > { %v4360_v56 = vpop.eup %4359 }
 0x425   : > { %3735 = vmatmul.mubr.msk.f32.vlgmr.msra.gmra.mrb[4].mxu1 %vm1288_vm2, %v4360_v56  ;;  %v1295_v24 = vsel %vm1288_vm2, %v4360_v56, 0.0 }
 0x426   : > { %3738 = vmatpush3.xpose.msk.msra.mxu1 %vm1211_vm1, %v1376_v39  ;;  %3739 = vmatprep.mubr.msk.f32.mxu1 %vm4814_vm0, %v4812_v0  ;;  %v3994_v39 = vpack.c.bf16 %v1893_v38, %v1892_v37  ;;  %v2110_v37 = vld [vmem:[#allocation14 + $0x40] sm:$0xff]  ;;  %v2112_v38 = vld [vmem:[#allocation14 + $0x50] sm:$0xff] }
 0x427   : > { %3742 = vmatprep.subr.mxu1 %v4812_v0  ;;  %3989 = vmatpush3.bf16.msra.mxu0 %v3988_v33  ;;  %v2108_v33 = vld [vmem:[#allocation14 + $0x30] sm:$0xff] }
 0x428   : > { %3990 = vmatprep.subr.bf16.mxu0 %v4813_v48 }
 0x429   : > { %3740 = vmatmul.mubr.msk.f32.vlgmr.msra.gmra.mrb[6].mxu1 %vm1211_vm1, %v1374_v53  ;;  %v1901_v53 = vld [vmem:[#allocation11 + $0x78] sm:$0xff] }
 0x42a   : > { %3744 = vmatprep.mubr.msk.f32.mxu1 %vm4814_vm0, %v4812_v0  ;;  %v4006_v55 = vpack.c.bf16 %v1901_v53, %v1900_v52  ;;  %v2121_v52 = vld [vmem:[#allocation14 + $0x98] sm:$0xff] }
 0x42b   : > { %3992 = vmatpush3.bf16.msra.mxu0 %v3991_v36  ;;  %v4040_v36 = vpack.c.bf16 %v2113_v35, %v2111_v34  ;;  %v2019_v34 = vld [vmem:[#allocation13 + $0x50] sm:$0xff]  ;;  %v2020_v35 = vld [vmem:[#allocation13 + $0x58] sm:$0xff] }
 0x42c   : > { %3993 = vmatprep.subr.bf16.mxu0 %v4813_v48 }
 0x42f   : > { %3995 = vmatpush3.bf16.msra.mxu0 %v3994_v39  ;;  %v2115_v39 = vld [vmem:[#allocation14 + $0x68] sm:$0xff] }
 0x430   : > { %3996 = vmatprep.subr.bf16.mxu0 %v4813_v48 }
 0x433   : > { %3998 = vmatpush3.bf16.msra.mxu0 %v3997_v42  ;;  %v2010_v42 = vld [vmem:[#allocation13 + $0x8] sm:$0xff] }
 0x434   : > { %3999 = vmatprep.subr.bf16.mxu0 %v4813_v48 }
 0x4ed   : > { %v1613_v57 = vpop.f32.mrb[2].mxu0 }
 0x4ee   : > { %v3751_v58 = vpop.f32.mrb[3].mxu0  ;;  %v1617_v60 = vsel %vm1288_vm2, %v1613_v57, -inf }
 0x4ef   : > { %1618 = vmax.xlane.f32.xlu0 %v1617_v60 }
 0x4f4   : > { %v1778_v61 = vpop.f32.mrb[4].mxu0 }
 0x4f5   : > { %v3761_v62 = vpop.f32.mrb[5].mxu0  ;;  %v1782_v63 = vsel %vm1288_vm2, %v1778_v61, -inf }
 0x4f6   : > { %1783 = vmax.xlane.f32.xlu0 %v1782_v63 }
 0x4f8   : > { %v5450_v2 = vpop.f32.mrb[4].mxu1 }
 0x4f9   : > { %v3736_v3 = vpop.f32.mrb[5].mxu1 }
 0x4fc   : > { %v1447_v4 = vpop.f32.mrb[6].mxu1 }
 0x4fd   : > { %v3741_v5 = vpop.f32.mrb[7].mxu1  ;;  %v1451_v6 = vsel %vm1288_vm2, %v1447_v4, -inf }
 0x4fe   : > { %1452 = vmax.xlane.f32.xlu1 %v1451_v6 }
 0x50c   : > { %1461 = vrot.lane.b32.xlu0 %v1208_v43, %s4815_s14 }
 0x50f   : > { %1791 = vrot.lane.b32.xlu1 %v1208_v43, %s4816_s20  ;;  %v1896_v43 = vld [vmem:[#allocation11 + $0x50] sm:$0xff] }
 0x510   : > { %v4000_v45 = vpack.c.bf16 %v1897_v44, %v1896_v43  ;;  %v4042_v43 = vpack.c.bf16 %v2112_v38, %v2110_v37  ;;  %v4009_v44 = vpack.c.bf16 %v2010_v42, %v2009_v41  ;;  %v2022_v37 = vld [vmem:[#allocation13 + $0x68] sm:$0xff] }
 0x512   : > { %4001 = vmatpush3.bf16.msra.mxu0 %v4000_v45  ;;  %v2011_v45 = vld [vmem:[#allocation13 + $0x10] sm:$0xff] }
 0x513   : > { %4002 = vmatprep.subr.bf16.mxu0 %v4813_v48 }
 0x516   : > { %4004 = vmatpush3.bf16.msra.mxu0 %v4003_v51  ;;  %v2119_v51 = vld [vmem:[#allocation14 + $0x88] sm:$0xff] }
 0x517   : > { %4005 = vmatprep.subr.bf16.mxu0 %v4813_v48 }
 0x51a   : > { %4007 = vmatpush3.bf16.msra.mxu0 %v4006_v55  ;;  %v4048_v55 = vpack.c.bf16 %v2121_v52, %v2119_v51 }
 0x57c   : > { %v1619_v7 = vpop.xlane.xlu0 %1618 }
 0x57d   : > { %v1620_v8 = vsub.f32 %v1613_v57, %v1619_v7 }
 0x57f   : > { %v1621_v9 = vmul.f32 1.442695, %v1620_v8 }
 0x581   : > { %4361 = vpow2.f32 %v1621_v9 }
 0x583   : > { %v1784_v10 = vpop.xlane.xlu0 %1783 }
 0x584   : > { %v1785_v11 = vsub.f32 %v1778_v61, %v1784_v10 }
 0x586   : > { %v1786_v12 = vmul.f32 1.442695, %v1785_v11 }
 0x587   : > { %v1462_v14 = vpop.permute.xlu0 %1461 }
 0x588   : > { %4363 = vpow2.f32 %v1786_v12  ;;  %3743 = vmatpush3.msra.mxu1 %v1462_v14 }
 0x589   : > { %3752 = vmatprep.subr.mxu1 %v4812_v0 }
 0x58b   : > { %v4362_v15 = vpop.eup %4361  ;;  %v1453_v16 = vpop.xlane.xlu1 %1452 }
 0x58c   : > { %v1454_v17 = vsub.f32 %v1447_v4, %v1453_v16  ;;  %v1623_v18 = vsel %vm1288_vm2, %v4362_v15, 0.0 }
 0x58d   : > { %1624 = vadd.xlane.f32.xlu0 %v1623_v18  ;;  %v3520_v18 = vld [vmem:[%s5826_s16] ss:$0 sm:$0xff] }
 0x58e   : > { %v1455_v19 = vmul.f32 1.442695, %v1454_v17 }
 0x58f   : > { %v1792_v27 = vpop.permute.xlu1 %1791 }
 0x590   : > { %4365 = vpow2.f32 %v1455_v19 }
 0x592   : > { %v4364_v20 = vpop.eup %4363 }
 0x593   : > { %v1788_v22 = vsel %vm1288_vm2, %v4364_v20, 0.0 }
 0x594   : > { %1789 = vadd.xlane.f32.xlu0 %v1788_v22  ;;  %v2103_v22 = vld [vmem:[#allocation14 + $0x8] sm:$0xff] }
 0x598   : > { %1296 = vadd.xlane.f32.xlu0 %v1295_v24  ;;  %v2105_v24 = vld [vmem:[#allocation14 + $0x18] sm:$0xff] }
 0x59a   : > { %v4366_v25 = vpop.eup %4365 }
 0x59b   : > { %3745 = vmatmul.mubr.msk.f32.vlgmr.msra.gmra.mrb[8].mxu1 %vm1288_vm2, %v4366_v25  ;;  %v1457_v26 = vsel %vm1288_vm2, %v4366_v25, 0.0  ;;  %v2102_v25 = vld [vmem:[#allocation14] sm:$0xff] }
 0x59c   : > { %3753 = vmatpush3.msra.mxu1 %v1627_v13  ;;  %1458 = vadd.xlane.f32.xlu1 %v1457_v26  ;;  %v4032_v26 = vpack.c.bf16 %v2105_v24, %v2103_v22  ;;  %v2130_v22 = vld [vmem:[#allocation14 + $0xe0] sm:$0xff]  ;;  %v2132_v24 = vld [vmem:[#allocation14 + $0xf0] sm:$0xff] }
 0x59d   : > { %3754 = vmatprep.mubr.msk.f32.mxu1 %vm4814_vm0, %v4812_v0  ;;  %3762 = vmatprep.subr.mxu1 %v4812_v0 }
 0x59e   : > { %4033 = vmatprep.subr.bf16.mxu0 %v4032_v26  ;;  %v2015_v26 = vld [vmem:[#allocation13 + $0x30] sm:$0xff] }
 0x59f   : > { %3755 = vmatmul.mubr.msk.f32.vlgmr.msra.gmra.mrb[10].mxu1 %vm1288_vm2, %v4362_v15 }
 0x5a0   : > { %3763 = vmatpush3.msra.mxu1 %v1792_v27  ;;  %3764 = vmatprep.mubr.msk.f32.mxu1 %vm4814_vm0, %v4812_v0  ;;  %v2104_v27 = vld [vmem:[#allocation14 + $0x10] sm:$0xff] }
 0x5a1   : > { %4008 = vmatprep.subr.bf16.mxu1 %v4813_v48  ;;  %v4034_v30 = vpack.c.bf16 %v2104_v27, %v2102_v25  ;;  %v4062_v25 = vpack.c.bf16 %v2132_v24, %v2130_v22  ;;  %v2016_v27 = vld [vmem:[#allocation13 + $0x38] sm:$0xff] }
 0x5a2   : > { %v4018_v28 = vpack.c.bf16 %v2016_v27, %v2015_v26 }
 0x5a3   : > { %3765 = vmatmul.mubr.msk.f32.vlgmr.msra.gmra.mrb[12].mxu1 %vm1288_vm2, %v4364_v20 }
 0x5a4   : > { %3834 = vmatprep.mubr.msk.f32.mxu1 %vm4814_vm0, %v4812_v0  ;;  %4010 = vmatpush3.bf16.msra.mxu1 %v4009_v44 }
 0x5a5   : > { %4011 = vmatprep.subr.bf16.mxu1 %v4813_v48 }
 0x61a   : > { %v1625_v50 = vpop.xlane.xlu0 %1624 }
 0x621   : > { %v1790_v54 = vpop.xlane.xlu0 %1789 }
 0x625   : > { %v1297_v8 = vpop.xlane.xlu0 %1296 }
 0x629   : > { %v1459_v46 = vpop.xlane.xlu1 %1458 }
 0x62a   : > { %4367 = vrcp.f32 %v1459_v46  ;;  %v4044_v46 = vpack.c.bf16 %v2117_v40, %v2115_v39  ;;  %v2023_v39 = vld [vmem:[#allocation13 + $0x70] sm:$0xff]  ;;  %v2024_v40 = vld [vmem:[#allocation13 + $0x78] sm:$0xff] }
 0x62b   : > { %4369 = vrcp.f32 %v1625_v50  ;;  %v2012_v50 = vld [vmem:[#allocation13 + $0x18] sm:$0xff]  ;;  %v4030_v41 = vpack.c.bf16 %v2024_v40, %v2023_v39 }
 0x62c   : > { %4371 = vrcp.f32 %v1790_v54  ;;  %v4012_v53 = vpack.c.bf16 %v2012_v50, %v2011_v45  ;;  %v4046_v54 = vpack.c.bf16 %v2116_v49, %v2114_v47  ;;  %v3522_v49 = vld [vmem:[%s5828_s25] ss:$0 sm:$0xff] }
 0x62d   : > { %4373 = vrcp.f32 %v1297_v8  ;;  %v2126_v8 = vld [vmem:[#allocation14 + $0xc0] sm:$0xff] }
 0x62e   : > { %4013 = vmatpush3.bf16.msra.mxu1 %v4012_v53  ;;  %v2134_v53 = vld [vmem:[%s5829_s27] sm:$0x3]  ;;  %s3545_s27 = sshll.u32 %s4970_s26, 7  ;;  %s4818_s26 = smov [#allocation20]  }
 0x62f   : > { %4014 = vmatprep.subr.bf16.mxu1 %v4813_v48  ;;  %s4713_s7 = sshll.u32 %s4818_s26, 4  ;;  %s4714_s7 = int_to_ptr.vmem [resolvable:$false] %s4713_s7 }
 0x630   : > { %p4716_p6 = scmp.lt.s32.totalorder %s5651_s10, %s4714_s7 }
 0x634   : > { %v4368_v56 = vpop.eup %4367 }
 0x635   : > { %v4370_v61 = vpop.eup %4369 }
 0x636   : > { %v4372_v4 = vpop.eup %4371 }
 0x637   : > { %v4374_v9 = vpop.eup %4373 }
 0x638   : > { %v1372_v11 = vmul.f32 %v4374_v9, %v5450_v2  ;;  %v2128_v9 = vld [vmem:[#allocation14 + $0xd0] sm:$0xff] }
 0x66e   : > { %v1533_v57 = vpop.f32.mrb[8].mxu1 }
 0x66f   : > { %v1538_v58 = vmul.f32 %v4368_v56, %v1533_v57  ;;  %v3746_v60 = vpop.f32.mrb[9].mxu1  ;;  %v2118_v56 = vld [vmem:[#allocation14 + $0x80] sm:$0xff]  ;;  %v2120_v57 = vld [vmem:[#allocation14 + $0x90] sm:$0xff] }
 0x670   : > { %v2125_v60 = vld [vmem:[#allocation14 + $0xb8] sm:$0xff] }
 0x671   : > { %1870 = vrot.lane.b32.xlu1 %v1538_v58, %s4816_s20  ;;  %v2123_v58 = vld [vmem:[#allocation14 + $0xa8] sm:$0xff] }
 0x672   : > { %v1698_v62 = vpop.f32.mrb[10].mxu1 }
 0x673   : > { %v1703_v63 = vmul.f32 %v4370_v61, %v1698_v62  ;;  %v3756_v3 = vpop.f32.mrb[11].mxu1  ;;  %v4050_v61 = vpack.c.bf16 %v2120_v57, %v2118_v56  ;;  %v4052_v62 = vpack.c.bf16 %v2125_v60, %v2123_v58  ;;  %v2143_v56 = vrot.slane %v2134_v53, %v5401_v23 }
 0x674   : > { %v2124_v3 = vld [vmem:[#allocation14 + $0xb0] sm:$0xff] }
 0x675   : > { %1874 = vrot.lane.b32.xlu0 %v1703_v63, %s4817_s12  ;;  %v2122_v63 = vld [vmem:[#allocation14 + $0xa0] sm:$0xff] }
 0x676   : > { %v1863_v5 = vpop.f32.mrb[12].mxu1 }
 0x677   : > { %v1868_v6 = vmul.f32 %v4372_v4, %v1863_v5  ;;  %v3766_v7 = vpop.f32.mrb[13].mxu1  ;;  %v2127_v4 = vld [vmem:[#allocation14 + $0xc8] sm:$0xff]  ;;  %v2129_v5 = vld [vmem:[#allocation14 + $0xd8] sm:$0xff] }
 0x678   : > { %v4056_v7 = vpack.c.bf16 %v2129_v5, %v2127_v4 }
 0x679   : > { %1878 = vrot.lane.b32.xlu1 %v1868_v6, %s4815_s14  ;;  %v4054_v6 = vpack.c.bf16 %v2124_v3, %v2122_v63 }
 0x6e3   : > { %v1871_v10 = vpop.permute.xlu1 %1870 }
 0x6e4   : > { %v1881_v13 = vsel %vm1211_vm1, %v1372_v11, %v1871_v10  ;;  %v4058_v10 = vpack.c.bf16 %v2128_v9, %v2126_v8  ;;  %v3523_v8 = vld [vmem:[%s5832_s29] ss:$0 sm:$0xff] }
 0x6e7   : > { %v1875_v12 = vpop.permute.xlu0 %1874 }
 0x6e8   : > { %v1883_v14 = vsel %vm1882_vm3, %v1881_v13, %v1875_v12 }
 0x6eb   : > { %v1879_v15 = vpop.permute.xlu1 %1878 }
 0x6ec   : > { %v1885_v16 = vsel %vm1884_vm4, %v1883_v14, %v1879_v15  ;;  %v2013_v15 = vld [vmem:[#allocation13 + $0x20] sm:$0xff] }
 0x6ed   : > { %3800 = vmatmul.mubr.f32.vlgmr.msra.gmra.mrb[6].mxu0 %v1885_v16  ;;  %v2014_v16 = vld [vmem:[#allocation13 + $0x28] sm:$0xff] }
 0x6ee   : > { %2210 = vmatprep.mubr.f32.mxu0 %v4812_v0  ;;  %4035 = vmatpush1.bf16.msra.mxu0 %v4034_v30  ;;  %v2017_v30 = vld [vmem:[#allocation13 + $0x40] sm:$0xff] }
 0x6ef   : > { %4037 = vmatprep.subr.bf16.mxu0 %v4036_v31  ;;  %v2018_v31 = vld [vmem:[#allocation13 + $0x48] sm:$0xff] }
 0x7c0   : > { %v1968_v17 = vpop.f32.mrb[6].mxu0 }
 0x7c1   : > { %v1972_v2 = vadd.f32 %v1968_v17, %v5372_v1  ;;  %v3801_v19 = vpop.f32.mrb[7].mxu0  ;;  %v4038_v1 = vpack.c.bf16 %v2108_v33, %v2106_v32  ;;  %v4015_v17 = vpack.c.bf16 %v2014_v16, %v2013_v15  ;;  %v4021_v32 = vpack.c.bf16 %v2018_v31, %v2017_v30  ;;  %v973_v33 = vld [vmem:[%s5353_s0 + $0x8] sm:$0xff] }
 0x7c3   : > { %v5490_v20 = vadd.f32 %v3520_v18, %v1972_v2  ;;  %4039 = vmatpush1.bf16.msra.mxu0 %v4038_v1  ;;  %v2131_v18 = vld [vmem:[#allocation14 + $0xe8] sm:$0xff]  ;;  %v2133_v2 = vld [vmem:[#allocation14 + $0xf8] sm:$0xff]  ;;  %4016 = vmatpush3.bf16.msra.mxu1 %v4015_v17  ;;  %v4024_v1 = vpack.c.bf16 %v2020_v35, %v2019_v34 }
 0x7c4   : > { %4041 = vmatprep.subr.bf16.mxu0 %v4040_v36  ;;  %v4060_v19 = vpack.c.bf16 %v2133_v2, %v2131_v18  ;;  %4017 = vmatprep.subr.bf16.mxu1 %v4813_v48  ;;  %v2021_v36 = vld [vmem:[#allocation13 + $0x60] sm:$0xff] }
 0x7c5   : > { %1983 = vadd.xlane.f32.xlu1 %v5490_v20  ;;  %v4027_v38 = vpack.c.bf16 %v2022_v37, %v2021_v36 }
 0x7c7   : > { %4043 = vmatpush1.bf16.msra.mxu0 %v4042_v43  ;;  %4019 = vmatpush3.bf16.msra.mxu1 %v4018_v28 }
 0x7c8   : > { %4045 = vmatprep.subr.bf16.mxu0 %v4044_v46  ;;  %4020 = vmatprep.subr.bf16.mxu1 %v4813_v48  ;;  %v3521_v46 = vld [vmem:[%s5827_s22] ss:$0 sm:$0xff] }
 0x7cb   : > { %4047 = vmatpush1.bf16.msra.mxu0 %v4046_v54  ;;  %4022 = vmatpush3.bf16.msra.mxu1 %v4021_v32  ;;  %v2139_v54 = vrot.slane %v2134_v53, %v5396_v21 }
 0x7cc   : > { %4049 = vmatprep.subr.bf16.mxu0 %v4048_v55  ;;  %4023 = vmatprep.subr.bf16.mxu1 %v4813_v48 }
 0x7cf   : > { %4051 = vmatpush1.bf16.msra.mxu0 %v4050_v61  ;;  %4025 = vmatpush3.bf16.msra.mxu1 %v4024_v1 }
 0x7d0   : > { %4053 = vmatprep.subr.bf16.mxu0 %v4052_v62  ;;  %4026 = vmatprep.subr.bf16.mxu1 %v4813_v48 }
 0x7d3   : > { %4055 = vmatpush1.bf16.msra.mxu0 %v4054_v6  ;;  %4028 = vmatpush3.bf16.msra.mxu1 %v4027_v38 }
 0x7d4   : > { %4057 = vmatprep.subr.bf16.mxu0 %v4056_v7  ;;  %4029 = vmatprep.subr.bf16.mxu1 %v4813_v48 }
 0x7d7   : > { %4059 = vmatpush1.bf16.msra.mxu0 %v4058_v10  ;;  %4031 = vmatpush3.bf16.msra.mxu1 %v4030_v41 }
 0x7d8   : > { %4061 = vmatprep.subr.bf16.mxu0 %v4060_v19  ;;  %4064 = vmatprep.subr.bf16.mxu1 %v4813_v48 }
 0x7db   : > { %4063 = vmatpush1.bf16.msra.mxu0 %v4062_v25 }
 0x7dc   : > { %4092 = vmatprep.subr.bf16.mxu0 %v4813_v48 }
 0x7de   : > { %2211 = vmatmul.mubr.f32.vlgmr.msra.gmra.mrb[8].mxu0 %v972_v29 }
 0x7df   : > { %2216 = vmatprep.mubr.f32.mxu0 %v4812_v0 }
 0x7e2   : > { %2217 = vmatmul.mubr.f32.gmra.mrb[10].mxu0 %v973_v33 }
 0x7e3   : > { %3925 = vmatprep.mubr.msk.f32.mxu0 %vm4814_vm0, %v4812_v0 }
 0x852   : > { %v1984_v11 = vpop.xlane.xlu1 %1983 }
 0x853   : > { %v1985_v12 = vmul.f32 0.0078125, %v1984_v11 }
 0x855   : > { %v1986_v13 = vsub.f32 %v5490_v20, %v1985_v12 }
 0x857   : > { %v1987_v14 = vmul.f32 %v1986_v13, %v1986_v13 }
 0x859   : > { %1988 = vadd.xlane.f32.xlu0 %v1987_v14 }
 0x8b1   : > { %v2212_v55 = vpop.f32.mrb[8].mxu0 }
 0x8b2   : > { %v2214_v57 = vpop.f32.mrb[9].mxu0  ;;  %v2213_v58 = vadd.f32 %v2212_v55, %v2139_v54 }
 0x8b3   : > { %v2215_v60 = vadd.f32 %v2214_v57, %v2143_v56 }
 0x8b5   : > { %v2218_v61 = vpop.f32.mrb[10].mxu0 }
 0x8b6   : > { %v2219_v62 = vadd.f32 %v2218_v61, %v2139_v54  ;;  %v2220_v63 = vpop.f32.mrb[11].mxu0 }
 0x8b8   : > { %v4065_v4 = vpack.c.bf16 %v2219_v62, %v2213_v58  ;;  %v5528_v5 = vpack.i.bf16 %v2219_v62, %v2213_v58 }
 0x8ba   : > { %4328 = vrot.lane.b32.xlu1 %v5528_v5, %s4815_s14 }
 0x8e6   : > { %v1989_v42 = vpop.xlane.xlu0 %1988 }
 0x8e7   : > { %v1990_v43 = vmul.f32 0.0078125, %v1989_v42 }
 0x8e9   : > { %v1991_v44 = vadd.f32 1e-05, %v1990_v43 }
 0x8eb   : > { %4375 = vrsqrt.f32 %v1991_v44 }
 0x8f5   : > { %v4376_v45 = vpop.eup %4375 }
 0x8f6   : > { %v1993_v47 = vmul.f32 %v4376_v45, %v1986_v13 }
 0x8f8   : > { %v2000_v50 = vmul.f32 %v3521_v46, %v1993_v47 }
 0x8fa   : > { %v2007_v51 = vadd.f32 %v3522_v49, %v2000_v50 }
 0x8fc   : > { %v2008_v52 = vadd.f32 %v2007_v51, %v5379_v59  ;;  %v2221_v59 = vadd.f32 %v2220_v63, %v2143_v56 }
 0x8fe   : > { %3835 = vmatmul.mubr.f32.vlgmr.msra.gmra.mrb[14].mxu1 %v2008_v52  ;;  %v4069_v6 = vpack.c.bf16 %v2221_v59, %v2215_v60  ;;  %v5530_v7 = vpack.i.bf16 %v2221_v59, %v2215_v60 }
 0x8ff   : > { %3841 = vmatprep.mubr.msk.f32.mxu1 %vm4814_vm0, %v4812_v0  ;;  %4067 = vmatpush3.bf16.xpose.msk.msra.mxu1 %vm5524_vm5, %v4065_v4 }
 0x900   : > { %4068 = vmatprep.subr.bf16.mxu1 %v4813_v48 }
 0x92c   : > { %v4329_v18 = vpop.permute.xlu1 %4328 }
 0x92d   : > { %v4331_v19 = vunpack.i.h.bf16 %v4329_v18  ;;  %v4330_v22 = vunpack.i.l.bf16 %v4329_v18 }
 0x92f   : > { %v4072_v25 = vpack.c.bf16 %v4331_v19, %v4330_v22 }
 0x9d1   : > { %v2098_v9 = vpop.f32.mrb[14].mxu1 }
 0x9d2   : > { %v2099_v10 = vadd.f32 %v3523_v8, %v2098_v9  ;;  %v3836_v11 = vpop.f32.mrb[15].mxu1 }
 0x9d4   : > { %3842 = vmatmul.mubr.msk.f32.vlgmr.msra.gmra.mrb[16].mxu1 %vm1211_vm1, %v2099_v10 }
 0x9d5   : > { %4070 = vmatpush3.bf16.msra.mxu1 %v4069_v6  ;;  %3848 = vmatprep.mubr.msk.f32.mxu1 %vm4814_vm0, %v4812_v0 }
 0x9d6   : > { %4071 = vmatprep.subr.bf16.mxu1 %v4813_v48 }
 0xaa7   : > { %v2298_v12 = vpop.f32.mrb[16].mxu1 }
 0xaa8   : > { %v3843_v13 = vpop.f32.mrb[17].mxu1  ;;  %v2303_v14 = vsel %vm2302_vm6, %v2298_v12, -inf }
 0xaa9   : > { %2304 = vmax.xlane.f32.xlu0 %v2303_v14 }
 0xabf   : > { %2387 = vrot.lane.b32.xlu0 %v2099_v10, %s4815_s14 }
 0xac3   : > { %4333 = vrot.lane.b32.xlu0 %v5530_v7, %s4815_s14 }
 0xac7   : > { %4338 = vrot.lane.b32.xlu0 %v5528_v5, %s4817_s12 }
 0xacb   : > { %2561 = vrot.lane.b32.xlu0 %v2099_v10, %s4817_s12 }
 0xb36   : > { %v2305_v15 = vpop.xlane.xlu0 %2304 }
 0xb37   : > { %v2306_v16 = vsub.f32 %v2298_v12, %v2305_v15 }
 0xb39   : > { %v2307_v17 = vmul.f32 1.442695, %v2306_v16 }
 0xb3a   : > { %v2388_v2 = vpop.permute.xlu0 %2387 }
 0xb3b   : > { %4377 = vpow2.f32 %v2307_v17 }
 0xb3e   : > { %v4334_v26 = vpop.permute.xlu0 %4333 }
 0xb3f   : > { %v4336_v27 = vunpack.i.h.bf16 %v4334_v26  ;;  %v4335_v28 = vunpack.i.l.bf16 %v4334_v26 }
 0xb41   : > { %v4076_v29 = vpack.c.bf16 %v4336_v27, %v4335_v28  ;;  %v2920_v27 = vld [vmem:[#allocation16] sm:$0xff]  ;;  %v2921_v28 = vld [vmem:[#allocation16 + $0x8] sm:$0xff] }
 0xb42   : > { %v4339_v37 = vpop.permute.xlu0 %4338 }
 0xb43   : > { %v4341_v38 = vunpack.i.h.bf16 %v4339_v37  ;;  %v4340_v39 = vunpack.i.l.bf16 %v4339_v37  ;;  %v2928_v37 = vld [vmem:[#allocation16 + $0x40] sm:$0xff] }
 0xb45   : > { %v5551_v24 = vpop.eup %4377  ;;  %v4079_v41 = vpack.c.bf16 %v4341_v38, %v4340_v39  ;;  %v2929_v38 = vld [vmem:[#allocation16 + $0x48] sm:$0xff] }
 0xb46   : > { %3849 = vmatmul.mubr.msk.f32.vlgmr.msra.gmra.mrb[18].mxu1 %vm2302_vm6, %v5551_v24  ;;  %v2562_v45 = vpop.permute.xlu0 %2561  ;;  %v2309_v22 = vsel %vm2302_vm6, %v5551_v24, 0.0  ;;  %v2926_v24 = vld [vmem:[#allocation16 + $0x30] sm:$0xff]  ;;  %v4105_v39 = vpack.c.bf16 %v2929_v38, %v2928_v37  ;;  %v3058_v37 = vld [vmem:[#allocation17 + $0x80] sm:$0xff] }
 0xb47   : > { %4074 = vmatpush3.bf16.xpose.msk.msra.mxu1 %vm5524_vm5, %v4072_v25  ;;  %3855 = vmatprep.mubr.msk.f32.mxu1 %vm4814_vm0, %v4812_v0  ;;  %v3060_v38 = vld [vmem:[#allocation17 + $0x90] sm:$0xff] }
 0xb48   : > { %4075 = vmatprep.subr.bf16.mxu1 %v4813_v48 }
 0xb4e   : > { %3856 = vmatmul.mubr.msk.f32.vlgmr.msra.gmra.mrb[20].mxu1 %vm1211_vm1, %v2388_v2 }
 0xb4f   : > { %4077 = vmatpush3.bf16.msra.mxu1 %v4076_v29  ;;  %3862 = vmatprep.mubr.msk.f32.mxu1 %vm4814_vm0, %v4812_v0  ;;  %v2922_v29 = vld [vmem:[#allocation16 + $0x10] sm:$0xff] }
 0xb50   : > { %4078 = vmatprep.subr.bf16.mxu1 %v4813_v48 }
 0xc19   : > { %v5564_v30 = vpop.f32.mrb[18].mxu1 }
 0xc1a   : > { %v3850_v31 = vpop.f32.mrb[19].mxu1 }
 0xc1b   : > { %v4093_v31 = vpack.c.bf16 %v2921_v28, %v2920_v27 }
 0xc1d   : > { %4094 = vmatpush3.bf16.msra.mxu0 %v4093_v31  ;;  %v3055_v31 = vld [vmem:[#allocation17 + $0x68] sm:$0xff] }
 0xc1e   : > { %4095 = vmatprep.subr.bf16.mxu0 %v4813_v48 }
 0xc21   : > { %v2465_v32 = vpop.f32.mrb[20].mxu1 }
 0xc22   : > { %v3857_v33 = vpop.f32.mrb[21].mxu1  ;;  %v2469_v34 = vsel %vm2302_vm6, %v2465_v32, -inf }
 0xc23   : > { %2470 = vmax.xlane.f32.xlu1 %v2469_v34  ;;  %v2925_v34 = vld [vmem:[#allocation16 + $0x28] sm:$0xff] }
 0xc34   : > { %4343 = vrot.lane.b32.xlu1 %v5530_v7, %s4817_s12 }
 0xc38   : > { %2733 = vrot.lane.b32.xlu1 %v2099_v10, %s4816_s20 }
 0xcb0   : > { %v2471_v35 = vpop.xlane.xlu1 %2470 }
 0xcb1   : > { %v2472_v1 = vsub.f32 %v2465_v32, %v2471_v35  ;;  %v2923_v32 = vld [vmem:[#allocation16 + $0x18] sm:$0xff] }
 0xcb2   : > { %v4096_v33 = vpack.c.bf16 %v2923_v32, %v2922_v29  ;;  %v3057_v32 = vld [vmem:[#allocation17 + $0x78] sm:$0xff] }
 0xcb3   : > { %v2473_v36 = vmul.f32 1.442695, %v2472_v1  ;;  %v2927_v1 = vld [vmem:[#allocation16 + $0x38] sm:$0xff] }
 0xcb4   : > { %v4344_v42 = vpop.permute.xlu1 %4343  ;;  %4097 = vmatpush3.bf16.msra.mxu0 %v4096_v33  ;;  %v4128_v33 = vpack.c.bf16 %v3057_v32, %v3055_v31  ;;  %v3186_v31 = vld [vmem:[#allocation19 + $0xd8] sm:$0xff] }
 0xcb5   : > { %4379 = vpow2.f32 %v2473_v36  ;;  %v4346_v43 = vunpack.i.h.bf16 %v4344_v42  ;;  %v4345_v44 = vunpack.i.l.bf16 %v4344_v42  ;;  %4098 = vmatprep.subr.bf16.mxu0 %v4813_v48  ;;  %v4102_v36 = vpack.c.bf16 %v2927_v1, %v2926_v24  ;;  %v3059_v24 = vld [vmem:[#allocation17 + $0x88] sm:$0xff]  ;;  %v3061_v1 = vld [vmem:[#allocation17 + $0x98] sm:$0xff] }
 0xcb7   : > { %v4083_v46 = vpack.c.bf16 %v4346_v43, %v4345_v44  ;;  %v2932_v43 = vld [vmem:[#allocation16 + $0x60] sm:$0xff]  ;;  %v2933_v44 = vld [vmem:[#allocation16 + $0x68] sm:$0xff] }
 0xcbf   : > { %v4380_v40 = vpop.eup %4379 }
 0xcc0   : > { %3863 = vmatmul.mubr.msk.f32.vlgmr.msra.gmra.mrb[22].mxu1 %vm2302_vm6, %v4380_v40  ;;  %v2475_v53 = vsel %vm2302_vm6, %v4380_v40, 0.0  ;;  %v2930_v40 = vld [vmem:[#allocation16 + $0x50] sm:$0xff] }
 0xcc1   : > { %4081 = vmatpush3.bf16.xpose.msk.msra.mxu1 %vm5524_vm5, %v4079_v41  ;;  %3869 = vmatprep.mubr.msk.f32.mxu1 %vm4814_vm0, %v4812_v0  ;;  %v2931_v41 = vld [vmem:[#allocation16 + $0x58] sm:$0xff] }
 0xcc2   : > { %4082 = vmatprep.subr.bf16.mxu1 %v4813_v48  ;;  %v4108_v42 = vpack.c.bf16 %v2931_v41, %v2930_v40  ;;  %v4134_v40 = vpack.c.bf16 %v3060_v38, %v3058_v37  ;;  %v3065_v41 = vld [vmem:[#allocation17 + $0xb8] sm:$0xff] }
 0xcc8   : > { %3870 = vmatmul.mubr.msk.f32.vlgmr.msra.gmra.mrb[24].mxu1 %vm1211_vm1, %v2562_v45  ;;  %v4111_v45 = vpack.c.bf16 %v2933_v44, %v2932_v43  ;;  %v3064_v43 = vld [vmem:[#allocation17 + $0xb0] sm:$0xff] }
 0xcc9   : > { %4084 = vmatpush3.bf16.msra.mxu1 %v4083_v46  ;;  %3876 = vmatprep.mubr.msk.f32.mxu1 %vm4814_vm0, %v4812_v0  ;;  %v2934_v46 = vld [vmem:[#allocation16 + $0x70] sm:$0xff] }
 0xcca   : > { %4085 = vmatprep.subr.bf16.mxu1 %v4813_v48 }
 0xd93   : > { %v2555_v47 = vpop.f32.mrb[22].mxu1 }
 0xd94   : > { %v3864_v49 = vpop.f32.mrb[23].mxu1 }
 0xd9b   : > { %v2639_v50 = vpop.f32.mrb[24].mxu1 }
 0xd9c   : > { %v3871_v51 = vpop.f32.mrb[25].mxu1  ;;  %v2643_v52 = vsel %vm2302_vm6, %v2639_v50, -inf }
 0xd9d   : > { %2644 = vmax.xlane.f32.xlu0 %v2643_v52 }
 0xdb3   : > { %4348 = vrot.lane.b32.xlu0 %v5528_v5, %s4816_s20  ;;  %v2734_v5 = vpop.permute.xlu1 %2733 }
 0xdb7   : > { %4353 = vrot.lane.b32.xlu0 %v5530_v7, %s4816_s20 }
 0xdd6   : > { %2476 = vadd.xlane.f32.xlu0 %v2475_v53 }
 0xe2a   : > { %v2645_v54 = vpop.xlane.xlu0 %2644 }
 0xe2b   : > { %v2646_v55 = vsub.f32 %v2639_v50, %v2645_v54 }
 0xe2d   : > { %v2647_v56 = vmul.f32 1.442695, %v2646_v55 }
 0xe2e   : > { %v4349_v57 = vpop.permute.xlu0 %4348 }
 0xe2f   : > { %4381 = vpow2.f32 %v2647_v56  ;;  %v4351_v58 = vunpack.i.h.bf16 %v4349_v57  ;;  %v4350_v60 = vunpack.i.l.bf16 %v4349_v57 }
 0xe31   : > { %v4086_v62 = vpack.c.bf16 %v4351_v58, %v4350_v60 }
 0xe32   : > { %v4354_v63 = vpop.permute.xlu0 %4353 }
 0xe33   : > { %v4356_v59 = vunpack.i.h.bf16 %v4354_v63  ;;  %v4355_v4 = vunpack.i.l.bf16 %v4354_v63 }
 0xe35   : > { %v4090_v6 = vpack.c.bf16 %v4356_v59, %v4355_v4  ;;  %v3540_v4 = vld [vmem:[%s5833_s9] ss:$0 sm:$0xff] }
 0xe39   : > { %v4382_v61 = vpop.eup %4381 }
 0xe3a   : > { %3877 = vmatmul.mubr.msk.f32.vlgmr.msra.gmra.mrb[26].mxu1 %vm2302_vm6, %v4382_v61  ;;  %v2649_v11 = vsel %vm2302_vm6, %v4382_v61, 0.0 }
 0xe3b   : > { %4088 = vmatpush3.bf16.xpose.msk.msra.mxu1 %vm5524_vm5, %v4086_v62  ;;  %3883 = vmatprep.mubr.msk.f32.mxu1 %vm4814_vm0, %v4812_v0 }
 0xe3c   : > { %4089 = vmatprep.subr.bf16.mxu1 %v4813_v48 }
 0xe42   : > { %3884 = vmatmul.mubr.msk.f32.vlgmr.msra.gmra.mrb[28].mxu1 %vm1211_vm1, %v2734_v5 }
 0xe43   : > { %4091 = vmatpush3.bf16.msra.mxu1 %v4090_v6  ;;  %3890 = vmatprep.mubr.msk.f32.mxu1 %vm4814_vm0, %v4812_v0 }
 0xe63   : > { %v2477_v19 = vpop.xlane.xlu0 %2476 }
 0xf0d   : > { %v2727_v7 = vpop.f32.mrb[26].mxu1 }
 0xf0e   : > { %v3878_v8 = vpop.f32.mrb[27].mxu1 }
 0xf0f   : > { %v3045_v8 = vld [vmem:[#allocation17 + $0x18] sm:$0xff] }
 0xf15   : > { %v2811_v9 = vpop.f32.mrb[28].mxu1 }
 0xf16   : > { %v3885_v3 = vpop.f32.mrb[29].mxu1  ;;  %v2815_v10 = vsel %vm2302_vm6, %v2811_v9, -inf }
 0xf17   : > { %2816 = vmax.xlane.f32.xlu1 %v2815_v10  ;;  %v3044_v10 = vld [vmem:[#allocation17 + $0x10] sm:$0xff] }
 0xf1b   : > { %2650 = vadd.xlane.f32.xlu1 %v2649_v11  ;;  %v3047_v11 = vld [vmem:[#allocation17 + $0x28] sm:$0xff] }
 0xfa4   : > { %v2817_v12 = vpop.xlane.xlu1 %2816 }
 0xfa5   : > { %v2818_v13 = vsub.f32 %v2811_v9, %v2817_v12  ;;  %v3042_v9 = vld [vmem:[#allocation17] sm:$0xff]  ;;  %v3049_v12 = vld [vmem:[#allocation17 + $0x38] sm:$0xff] }
 0xfa7   : > { %v2819_v14 = vmul.f32 1.442695, %v2818_v13  ;;  %v4118_v13 = vpack.c.bf16 %v3044_v10, %v3042_v9  ;;  %v3179_v9 = vld [vmem:[#allocation19 + $0xa0] sm:$0xff] }
 0xfa8   : > { %v2651_v15 = vpop.xlane.xlu1 %2650 }
 0xfa9   : > { %4383 = vpow2.f32 %v2819_v14  ;;  %v4120_v14 = vpack.c.bf16 %v3049_v12, %v3047_v11  ;;  %v3163_v12 = vld [vmem:[#allocation19 + $0x20] sm:$0xff] }
 0xfaa   : > { %4385 = vrcp.f32 %v2651_v15  ;;  %v3046_v15 = vld [vmem:[#allocation17 + $0x20] sm:$0xff] }
 0xfab   : > { %4387 = vrcp.f32 %v2477_v19  ;;  %v3050_v19 = vld [vmem:[#allocation17 + $0x40] sm:$0xff] }
 0xfb3   : > { %v4384_v16 = vpop.eup %4383 }
 0xfb4   : > { %v4386_v17 = vpop.eup %4385  ;;  %3891 = vmatmul.mubr.msk.f32.vlgmr.msra.gmra.mrb[30].mxu1 %vm2302_vm6, %v4384_v16  ;;  %v2821_v18 = vsel %vm2302_vm6, %v4384_v16, 0.0  ;;  %v3048_v16 = vld [vmem:[#allocation17 + $0x30] sm:$0xff] }
 0xfb5   : > { %2822 = vadd.xlane.f32.xlu1 %v2821_v18  ;;  %v2732_v2 = vmul.f32 %v4386_v17, %v2727_v7  ;;  %3150 = vmatprep.mubr.f32.mxu1 %v4812_v0  ;;  %v4388_v25 = vpop.eup %4387  ;;  %v2924_v0 = vld [vmem:[#allocation16 + $0x20] sm:$0xff]  ;;  %v3051_v17 = vld [vmem:[#allocation17 + $0x48] sm:$0xff]  ;;  %v3053_v18 = vld [vmem:[#allocation17 + $0x58] sm:$0xff] }
 0xfb6   : > { %v2560_v26 = vmul.f32 %v4388_v25, %v2555_v47  ;;  %v4099_v35 = vpack.c.bf16 %v2925_v34, %v2924_v0  ;;  %v2935_v47 = vld [vmem:[#allocation16 + $0x78] sm:$0xff]  ;;  %v3054_v0 = vld [vmem:[#allocation17 + $0x60] sm:$0xff]  ;;  %v3056_v34 = vld [vmem:[#allocation17 + $0x70] sm:$0xff] }
 0xfb7   : > { %2910 = vrot.lane.b32.xlu0 %v2732_v2, %s4817_s12  ;;  %v4114_v49 = vpack.c.bf16 %v2935_v47, %v2934_v46  ;;  %v4124_v2 = vpack.c.bf16 %v3053_v18, %v3051_v17  ;;  %v3069_v46 = vld [vmem:[#allocation17 + $0xd8] sm:$0xff]  ;;  %v3165_v18 = vld [vmem:[#allocation19 + $0x30] sm:$0xff]  ;;  %s5839_s12 = sld [smem:[#allocation56_spill]] }
 0xfb8   : > { %4100 = vmatpush3.bf16.msra.mxu0 %v4099_v35  ;;  %v4130_v35 = vpack.c.bf16 %v3056_v34, %v3054_v0  ;;  %v3169_v0 = vld [vmem:[#allocation19 + $0x50] sm:$0xff]  ;;  %v3170_v34 = vld [vmem:[#allocation19 + $0x58] sm:$0xff] }
 0xfb9   : > { %2310 = vadd.xlane.f32.xlu1 %v2309_v22  ;;  %4101 = vmatprep.subr.bf16.mxu0 %v4813_v48  ;;  %v3052_v22 = vld [vmem:[#allocation17 + $0x50] sm:$0xff] }
 0xfba   : > { %v4126_v25 = vpack.c.bf16 %v3052_v22, %v3050_v19  ;;  %v3184_v19 = vld [vmem:[#allocation19 + $0xc8] sm:$0xff] }
 0xfbc   : > { %4103 = vmatpush3.bf16.msra.mxu0 %v4102_v36  ;;  %v4132_v36 = vpack.c.bf16 %v3061_v1, %v3059_v24  ;;  %v3188_v24 = vld [vmem:[#allocation19 + $0xe8] sm:$0xff]  ;;  %v4170_v1 = vpack.c.bf16 %v3170_v34, %v3169_v0 }
 0xfbd   : > { %4104 = vmatprep.subr.bf16.mxu0 %v4813_v48  ;;  %s5649_s9 = scalar_lea.hbm %s5839_s12, %s3545_s27 }
 0xfc0   : > { %4106 = vmatpush3.bf16.msra.mxu0 %v4105_v39  ;;  %v3063_v39 = vld [vmem:[#allocation17 + $0xa8] sm:$0xff] }
 0xfc1   : > { %4107 = vmatprep.subr.bf16.mxu0 %v4813_v48  ;;  %v4136_v44 = vpack.c.bf16 %v3065_v41, %v3063_v39  ;;  %v3541_v41 = vld [vmem:[%s5834_s21] ss:$0 sm:$0xff]  ;;  %s4715_s21 = scalar_lea.vmem %s4714_s7, 256 }
 0xfc2   : > { %p4717_p13 = scmp.lt.s32.totalorder %s4715_s21, %s4709_s8 }
 0xfc4   : > { %4109 = vmatpush3.bf16.msra.mxu0 %v4108_v42  ;;  %v3062_v42 = vld [vmem:[#allocation17 + $0xa0] sm:$0xff]  ;;  %p4718_p11 = por %p4717_p13, %p4716_p6 }
 0xfc5   : > { %4110 = vmatprep.subr.bf16.mxu0 %v4813_v48  ;;  %v4138_v47 = vpack.c.bf16 %v3064_v43, %v3062_v42  ;;  %v3542_v43 = vld [vmem:[%s5835_s18] ss:$0 sm:$0xff] }
 0xfc6   : > { %p4719_p3 = pnand %p4718_p11, %p4712_p9 }
 0xfc8   : > { %4112 = vmatpush3.bf16.msra.mxu0 %v4111_v45  ;;  %v3067_v45 = vld [vmem:[#allocation17 + $0xc8] sm:$0xff] }
 0xfc9   : > { %4113 = vmatprep.subr.bf16.mxu0 %v4813_v48 }
 0xfca   : > { %2906 = vrot.lane.b32.xlu1 %v2560_v26, %s4816_s20 }
 0xfcc   : > { %4115 = vmatpush3.bf16.msra.mxu0 %v4114_v49  ;;  %v4140_v49 = vpack.c.bf16 %v3069_v46, %v3067_v45  ;;  %v3171_v46 = vld [vmem:[#allocation19 + $0x60] sm:$0xff] }
0x1029   : > { %v2911_v61 = vpop.permute.xlu0 %2910 }
0x1042   : > { %v2823_v50 = vpop.xlane.xlu1 %2822 }
0x1043   : > { %4389 = vrcp.f32 %v2823_v50  ;;  %v3066_v50 = vld [vmem:[#allocation17 + $0xc0] sm:$0xff] }
0x1046   : > { %v2311_v55 = vpop.xlane.xlu1 %2310 }
0x1047   : > { %4391 = vrcp.f32 %v2311_v55 }
0x104a   : > { %v2907_v58 = vpop.permute.xlu1 %2906 }
0x104d   : > { %v4390_v51 = vpop.eup %4389 }
0x1051   : > { %v4392_v56 = vpop.eup %4391 }
0x1052   : > { %v2386_v57 = vmul.f32 %v4392_v56, %v5564_v30  ;;  %v3043_v30 = vld [vmem:[#allocation17 + $0x8] sm:$0xff]  ;;  %v3070_v56 = vld [vmem:[#allocation17 + $0xe0] sm:$0xff] }
0x1053   : > { %v4116_v3 = vpack.c.bf16 %v3045_v8, %v3043_v30  ;;  %v3161_v30 = vld [vmem:[#allocation19 + $0x10] sm:$0xff]  ;;  %v3162_v8 = vld [vmem:[#allocation19 + $0x18] sm:$0xff] }
0x1054   : > { %v2917_v60 = vsel %vm1211_vm1, %v2386_v57, %v2907_v58  ;;  %v3072_v57 = vld [vmem:[#allocation17 + $0xf0] sm:$0xff]  ;;  %v4154_v10 = vpack.c.bf16 %v3162_v8, %v3161_v30 }
0x1055   : > { %v2918_v48 = vsel %vm1882_vm3, %v2917_v60, %v2911_v61  ;;  %4117 = vmatprep.subr.bf16.mxu1 %v4116_v3  ;;  %v4146_v58 = vpack.c.bf16 %v3072_v57, %v3070_v56  ;;  %v3175_v60 = vld [vmem:[#allocation19 + $0x80] sm:$0xff]  ;;  %v3176_v61 = vld [vmem:[#allocation19 + $0x88] sm:$0xff] }
0x1056   : > { %4119 = vmatpush1.bf16.msra.mxu1 %v4118_v13  ;;  %v3180_v3 = vld [vmem:[#allocation19 + $0xa8] sm:$0xff] }
0x1057   : > { %4121 = vmatprep.subr.bf16.mxu1 %v4120_v14  ;;  %v4156_v11 = vpack.c.bf16 %v3180_v3, %v3179_v9  ;;  %v3164_v13 = vld [vmem:[#allocation19 + $0x28] sm:$0xff]  ;;  %v3181_v14 = vld [vmem:[#allocation19 + $0xb0] sm:$0xff] }
0x1087   : > { %v2899_v52 = vpop.f32.mrb[30].mxu1 }
0x1088   : > { %v2904_v53 = vmul.f32 %v4390_v51, %v2899_v52  ;;  %v3892_v54 = vpop.f32.mrb[31].mxu1  ;;  %v3068_v51 = vld [vmem:[#allocation17 + $0xd0] sm:$0xff]  ;;  %v3071_v52 = vld [vmem:[#allocation17 + $0xe8] sm:$0xff] }
0x1089   : > { %v4142_v54 = vpack.c.bf16 %v3068_v51, %v3066_v50  ;;  %v3189_v50 = vld [vmem:[#allocation19 + $0xf0] sm:$0xff]  ;;  %v3190_v51 = vld [vmem:[#allocation19 + $0xf8] sm:$0xff] }
0x108a   : > { %2914 = vrot.lane.b32.xlu1 %v2904_v53, %s4815_s14  ;;  %v3073_v53 = vld [vmem:[#allocation17 + $0xf8] sm:$0xff]  ;;  %s3272_s14 = scalar_lea.sflag [#allocation4], %s5335_s6 }
0x108b   : > { %v4144_v55 = vpack.c.bf16 %v3073_v53, %v3071_v52  ;;  %v4176_v52 = vpack.c.bf16 %v3190_v51, %v3189_v50  ;;  %v3173_v53 = vld [vmem:[#allocation19 + $0x70] sm:$0xff] }
0x10fc   : > { %v2915_v62 = vpop.permute.xlu1 %2914 }
0x10fd   : > { %v2919_v63 = vsel %vm1884_vm4, %v2918_v48, %v2915_v62  ;;  %v3159_v48 = vld [vmem:[#allocation19] sm:$0xff]  ;;  %v4148_v62 = vpack.c.bf16 %v3176_v61, %v3175_v60 }
0x10fe   : > { %3926 = vmatmul.mubr.f32.vlgmr.msra.gmra.mrb[12].mxu0 %v2919_v63  ;;  %v3160_v63 = vld [vmem:[#allocation19 + $0x8] sm:$0xff] }
0x10ff   : > { %4149 = vmatprep.subr.bf16.mxu0 %v4148_v62 }
0x11d1   : > { %v3002_v59 = vpop.f32.mrb[12].mxu0 }
0x11d2   : > { %v3006_v5 = vadd.f32 %v3002_v59, %v5490_v20  ;;  %v3927_v6 = vpop.f32.mrb[13].mxu0  ;;  %v4122_v20 = vpack.c.bf16 %v3048_v16, %v3046_v15  ;;  %v3177_v59 = vld [vmem:[#allocation19 + $0x90] sm:$0xff]  ;;  %v3182_v15 = vld [vmem:[#allocation19 + $0xb8] sm:$0xff]  ;;  %v4158_v16 = vpack.c.bf16 %v3164_v13, %v3163_v12 }
0x11d3   : > { %v4160_v17 = vpack.c.bf16 %v3182_v15, %v3181_v14 }
0x11d4   : > { %v5620_v7 = vadd.f32 %v3540_v4, %v3006_v5  ;;  %4123 = vmatpush1.bf16.msra.mxu1 %v4122_v20  ;;  %v3178_v4 = vld [vmem:[#allocation19 + $0x98] sm:$0xff]  ;;  %v4150_v5 = vpack.c.bf16 %v3160_v63, %v3159_v48 }
0x11d5   : > { %4125 = vmatprep.subr.bf16.mxu1 %v4124_v2  ;;  %v4152_v6 = vpack.c.bf16 %v3178_v4, %v3177_v59  ;;  %v3166_v20 = vld [vmem:[#allocation19 + $0x38] sm:$0xff]  ;;  %v3183_v2 = vld [vmem:[#allocation19 + $0xc0] sm:$0xff] }
0x11d6   : > { %3017 = vadd.xlane.f32.xlu1 %v5620_v7  ;;  %4151 = vmatpush3.bf16.msra.mxu0 %v4150_v5  ;;  %v4162_v22 = vpack.c.bf16 %v3166_v20, %v3165_v18 }
0x11d7   : > { %4153 = vmatprep.subr.bf16.mxu0 %v4152_v6  ;;  %v3543_v6 = vld [vmem:[%s5838_s24] ss:$0 sm:$0xff] }
0x11d8   : > { %4127 = vmatpush1.bf16.msra.mxu1 %v4126_v25  ;;  %v4164_v25 = vpack.c.bf16 %v3184_v19, %v3183_v2 }
0x11d9   : > { %4129 = vmatprep.subr.bf16.mxu1 %v4128_v33 }
0x11da   : > { %4155 = vmatpush3.bf16.msra.mxu0 %v4154_v10 }
0x11db   : > { %4157 = vmatprep.subr.bf16.mxu0 %v4156_v11 }
0x11dc   : > { %4131 = vmatpush1.bf16.msra.mxu1 %v4130_v35  ;;  %v3187_v35 = vld [vmem:[#allocation19 + $0xe0] sm:$0xff] }
0x11dd   : > { %4133 = vmatprep.subr.bf16.mxu1 %v4132_v36  ;;  %v4172_v36 = vpack.c.bf16 %v3188_v24, %v3187_v35 }
0x11de   : > { %4159 = vmatpush3.bf16.msra.mxu0 %v4158_v16 }
0x11df   : > { %4161 = vmatprep.subr.bf16.mxu0 %v4160_v17 }
0x11e0   : > { %4135 = vmatpush1.bf16.msra.mxu1 %v4134_v40 }
0x11e1   : > { %4137 = vmatprep.subr.bf16.mxu1 %v4136_v44 }
0x11e2   : > { %4163 = vmatpush3.bf16.msra.mxu0 %v4162_v22 }
0x11e3   : > { %4165 = vmatprep.subr.bf16.mxu0 %v4164_v25 }
0x11e4   : > { %4139 = vmatpush1.bf16.msra.mxu1 %v4138_v47  ;;  %v3172_v47 = vld [vmem:[#allocation19 + $0x68] sm:$0xff] }
0x11e5   : > { %4141 = vmatprep.subr.bf16.mxu1 %v4140_v49  ;;  %v4174_v49 = vpack.c.bf16 %v3172_v47, %v3171_v46 }
0x11e8   : > { %4143 = vmatpush1.bf16.msra.mxu1 %v4142_v54  ;;  %v3174_v54 = vld [vmem:[#allocation19 + $0x78] sm:$0xff] }
0x11e9   : > { %4145 = vmatprep.subr.bf16.mxu1 %v4144_v55  ;;  %v4178_v55 = vpack.c.bf16 %v3174_v54, %v3173_v53 }
0x11ec   : > { %4147 = vmatpush1.bf16.msra.mxu1 %v4146_v58 }
0x1263   : > { %v3018_v26 = vpop.xlane.xlu1 %3017 }
0x1264   : > { %v3019_v27 = vmul.f32 0.0078125, %v3018_v26  ;;  %v3167_v26 = vld [vmem:[#allocation19 + $0x40] sm:$0xff] }
0x1266   : > { %v5624_v28 = vsub.f32 %v5620_v7, %v3019_v27  ;;  %v3168_v27 = vld [vmem:[#allocation19 + $0x48] sm:$0xff] }
0x1267   : > { %v4166_v32 = vpack.c.bf16 %v3168_v27, %v3167_v26 }
0x1268   : > { %v3021_v29 = vmul.f32 %v5624_v28, %v5624_v28 }
0x1269   : > { %4167 = vmatpush3.bf16.msra.mxu0 %v4166_v32 }
0x126a   : > { %3022 = vadd.xlane.f32.xlu0 %v3021_v29  ;;  %v3185_v29 = vld [vmem:[#allocation19 + $0xd0] sm:$0xff] }
0x126b   : > { %v4168_v33 = vpack.c.bf16 %v3186_v31, %v3185_v29 }
0x126d   : > { %4169 = vmatprep.subr.bf16.mxu0 %v4168_v33 }
0x126e   : > { %4171 = vmatpush3.bf16.msra.mxu0 %v4170_v1 }
0x126f   : > { %4173 = vmatprep.subr.bf16.mxu0 %v4172_v36 }
0x1272   : > { %4175 = vmatpush3.bf16.msra.mxu0 %v4174_v49 }
0x1273   : > { %4177 = vmatprep.subr.bf16.mxu0 %v4176_v52 }
0x1276   : > { %4179 = vmatpush3.bf16.msra.mxu0 %v4178_v55 }
0x12f7   : > { %v3023_v37 = vpop.xlane.xlu0 %3022 }
0x12f8   : > { %v3024_v38 = vmul.f32 0.0078125, %v3023_v37 }
0x12fa   : > { %v3025_v39 = vadd.f32 1e-05, %v3024_v38 }
0x12fc   : > { %4393 = vrsqrt.f32 %v3025_v39 }
0x1306   : > { %v4394_v40 = vpop.eup %4393 }
0x1307   : > { %v3027_v42 = vmul.f32 %v4394_v40, %v5624_v28  ;;  %v3074_v28 = vld [vmem:[%s5836_s15] sm:$0x3] }
0x1308   : > { %v3079_v56 = vrot.slane %v3074_v28, %v5396_v21  ;;  %v3083_v57 = vrot.slane %v3074_v28, %v5401_v23 }
0x1309   : > { %v3034_v44 = vmul.f32 %v3541_v41, %v3027_v42 }
0x130b   : > { %v3041_v45 = vadd.f32 %v3542_v43, %v3034_v44 }
0x130d   : > { %3151 = vmatmul.mubr.f32.vlgmr.msra.gmra.mrb[32].mxu1 %v3041_v45 }
0x13e0   : > { %v3152_v58 = vpop.f32.mrb[32].mxu1 }
0x13e1   : > { %v3153_v60 = vadd.f32 %v3152_v58, %v3079_v56  ;;  %v3154_v61 = vpop.f32.mrb[33].mxu1 }
0x13e2   : > { %v3155_v48 = vadd.f32 %v3154_v61, %v3083_v57 }
0x13e3   : > { %v3157_v63 = vmax.f32 %v3153_v60, 0.0 }
0x13e4   : > { %v3158_v62 = vmax.f32 %v3155_v48, 0.0 }
0x13e6   : > { %3255 = vmatprep.mubr.f32.mxu0 %v3158_v62 }
0x13e7   : > { %3256 = vmatmul.mubr.f32.vlgmr.msra.gmra.mrb[14].mxu0 %v3157_v63 }
0x14ba   : > { %v3689_v59 = vpop.f32.mrb[14].mxu0 }
0x14bb   : > { %v3690_v4 = vpop.f32.mrb[15].mxu0 }
0x14bc   : > { %v3691_v5 = vadd.f32 %v3690_v4, %v3689_v59 }
0x14be   : > { %v3261_v21 = vadd.f32 %v3691_v5, %v5620_v7 }
0x14c0   : > { %v3269_v23 = vadd.f32 %v3543_v6, %v3261_v21 }
0x14c2   : > { %3270 = vst [vmem:[%s969_s19] sm:$0xff] %v3269_v23 }
0x14c3   : > { %4722 = shalt.err (!%p4719_p3)
}
0x14c4   : > { %s4723_s6 = scalar_lea.hbm %s5649_s9, 128  ;;  %s4727_s18 = scalar_lea.hbm %s5839_s12, 256 }
0x14c5   : > { %p4724_p12 = scmp.ne.s32.totalorder %s5649_s9, %s4723_s6  ;;  %p4728_p8 = scmp.lt.u32.totalorder %s5649_s9, %s5839_s12 }
0x14c6   : > { %p4729_p1 = scmp.lt.u32.totalorder %s4727_s18, %s4723_s6  ;;  %p4731_p4 = scmp.lt.u32.totalorder %s4723_s6, %s5649_s9 }
0x14c7   : > { %p4725_p0 = pnand %p4724_p12, %p5840_p10 }
0x14c8   : > { %p4730_p2 = por %p4729_p1, %p4728_p8 }
0x14c9   : > { %p4726_p5 = pneg %p4725_p0 }
0x14ca   : > { %p4732_p7 = por %p4731_p4, %p4730_p2 }
0x14cc   : > { %p4733_p9 = pnand %p4732_p7, %p4726_p5 }
0x14ce   : > { %4736 = shalt.err (!%p4733_p9)
}
0x14cf   : > { %4218 = dma.vmem_to_hbm [thread:$0]  (%p5840_p10), %s5651_s10, 128, %s5649_s9, %s3272_s14  }
0x14d0 PF: > { %s5841_s15 = sld [smem:[#allocation28_spill]]  ;;  %s5842_s25 = sld [smem:[#allocation33_spill]] }
0x14d1   : > { %p5844_p13 = scmp.ge.s32.totalorder %s4795_s30, 2 }
0x14d6   : > { %s3297_s5 = sand.u32 1, %s5841_s15   ;;  %p5843_p6 = scmp.ne.s32.totalorder %s5842_s25, 0 }
0x14d7   : > { %s3298_s24 = scalar_lea.sflag [#allocation4], %s3297_s5 }
0x14d8   : > { %p4256_p11 = pnand %p5844_p13, %p5843_p6 }
0x14da   : > { %4778 = dma.done.wait (!%p4256_p11), %s3298_s24, 128  }
0x14db   : > { %4780 = vsyncadd (!%p4256_p11), %s3298_s24, 4294967168  ;;  %s5845_s30 = sld [smem:[#allocation30_spill]]  ;;  %s5846_s27 = sld [smem:[#allocation29_spill]] }
0x14dc   : > { %s5847_s6 = sld [smem:[#allocation31_spill]]  ;;  %s5848_s29 = smov %s4787_s2 }
0x14e1   : > { %p45_p3 = scmp.ge.s32.totalorder %s5845_s30, 4   ;;  %s5849_s2 = smov %s5846_s27 }
0x14e3   :  { %47 = sbr.rel (!%p45_p3) target bundleno = 35 (0x23), region = 221 }
0x14ea   :  { %3303 = vsyncpa [#allocation3], 1 }
0x14eb   :  { %3305 = vsyncpa [#allocation3 + $0x1], 1 }
0x14ec   :  { %3306 = vsyncpa [#allocation6], 1 }
0x14ed   :  { %3308 = vsyncpa [#allocation6 + $0x1], 1 }
0x14ee   :  { %3309 = vsyncpa [#allocation9], 1 }
0x14ef   :  { %3310 = vsyncpa [#allocation12], 1 }
0x14f0   :  { %3311 = vsyncpa [#allocation15], 1 }
0x14f1   :  { %3312 = vsyncpa [#allocation18], 1 }
0x14f2   :  { %3313 = vsyncpa [#allocation4], 1 }
0x14f3   :  { %3315 = vsyncpa [#allocation4 + $0x1], 1 }

</bundles_post_ra>
